<compile_context>
chip_gen: v5e
topology: v5e:2x2
jax: 0.10.0
libtpu: 0.0.40
codegen_flags: <defaults>
</compile_context>

<pallas_src>
import functools

import jax
import jax.numpy as jnp
from jax.experimental import pallas as pl
from jax.experimental.pallas import tpu as pltpu


def _sepconv_kernel(x_ref, fw_ref, b_ref, o_ref, *,
                    KH, KW, N, Ho, Wo, C, Cout, sh, sw, dil_h, dil_w):
    # x_ref:  (N, Hp, Wp, C)       padded NHWC input (whole batch)
    # fw_ref: (KH*KW, Cout, C)     fused per-tap weights: dw[tap, c] * pw[co, c]
    # b_ref:  (Cout, 1)            pointwise bias (broadcast over pixels/lanes)
    # o_ref:  (Cout, N*Ho*Wo)      lane-dense output slab
    x = x_ref[...].astype(jnp.float32)
    rows = N * Ho * Wo

    acc = jnp.zeros((Cout, rows), jnp.float32)
    # Static tap loop (KH*KW iterations, unrolled at trace time).
    for kh in range(KH):
        for kw in range(KW):
            h0 = kh * dil_h
            w0 = kw * dil_w
            # NOTE: for stride > 1 a wrapper-side pre-stride would avoid the strided
            # sublane slice; the default (and tested) configuration is stride == 1.
            patch = jax.lax.slice(
                x,
                (0, h0, w0, 0),
                (N, h0 + (Ho - 1) * sh + 1, w0 + (Wo - 1) * sw + 1, C),
                (1, sh, sw, 1),
            )                                     # (N, Ho, Wo, C)
            patch2d = patch.reshape(rows, C)      # leading-dim collapse (layout-free)
            fw_tap = fw_ref[kh * KW + kw].astype(jnp.float32)   # (Cout, C)
            # (Cout, C) x (rows, C), contracting C  ->  (Cout, rows) on the MXU.
            acc = acc + jax.lax.dot_general(
                fw_tap, patch2d,
                dimension_numbers=(((1,), (1,)), ((), ())),
                preferred_element_type=jnp.float32,
            )

    out = acc + b_ref[...].astype(jnp.float32)    # (Cout, rows) + (Cout, 1)
    o_ref[...] = out.astype(o_ref.dtype)


def separable_conv2d(x_nchw, dw_weight, pw_weight, pw_bias,
                     stride=(1, 1), padding=(1, 1), dilation=(1, 1)):
    """SeparableConv2d forward (padding_mode='zeros', norm=None, activation=None).

    x_nchw:    (N, C, H, W)
    dw_weight: (C, 1, KH, KW)      -- torch depthwise conv weight layout
    pw_weight: (Cout, C, 1, 1)     -- torch 1x1 conv weight layout
    pw_bias:   (Cout,)
    returns:   (N, Cout, Ho, Wo)
    """
    N, C, H, W = x_nchw.shape
    Cout = pw_weight.shape[0]
    KH, KW = dw_weight.shape[2], dw_weight.shape[3]
    sh, sw = stride
    ph, pw_pad = padding
    dil_h, dil_w = dilation

    # NCHW -> NHWC, zero pad spatially (matches F.pad with padding_mode='zeros').
    x = jnp.transpose(x_nchw, (0, 2, 3, 1))
    x = jnp.pad(x, ((0, 0), (ph, ph), (pw_pad, pw_pad), (0, 0)))
    Hp, Wp = H + 2 * ph, W + 2 * pw_pad

    Ho = (Hp - (dil_h * (KH - 1) + 1)) // sh + 1
    Wo = (Wp - (dil_w * (KW - 1) + 1)) // sw + 1
    rows = N * Ho * Wo

    # Fuse depthwise and pointwise weights per tap (wrapper-side, once):
    #   fused_w[t, co, c] = dw[t, c] * pw[co, c]
    dw_taps = jnp.transpose(dw_weight[:, 0, :, :], (1, 2, 0)).reshape(KH * KW, C)
    pw_t = pw_weight[:, :, 0, 0]                                  # (Cout, C)
    fused_w = (dw_taps[:, None, :].astype(jnp.float32)
               * pw_t[None, :, :].astype(jnp.float32))            # (KH*KW, Cout, C)
    bias = pw_bias.reshape(Cout, 1).astype(jnp.float32)

    kernel = functools.partial(
        _sepconv_kernel,
        KH=KH, KW=KW, N=N, Ho=Ho, Wo=Wo, C=C, Cout=Cout,
        sh=sh, sw=sw, dil_h=dil_h, dil_w=dil_w,
    )

    itemsize = jnp.dtype(x_nchw.dtype).itemsize
    flops = 2 * KH * KW * rows * C * Cout + rows * Cout
    bytes_accessed = int(N * Hp * Wp * C * itemsize
                         + fused_w.size * 4 + bias.size * 4
                         + rows * Cout * itemsize)

    out2d = pl.pallas_call(
        kernel,
        out_shape=jax.ShapeDtypeStruct((Cout, rows), x_nchw.dtype),
        grid_spec=pltpu.PrefetchScalarGridSpec(
            num_scalar_prefetch=0,
            grid=(1,),   # whole (small) batch in a single invocation
            in_specs=[
                pl.BlockSpec((N, Hp, Wp, C), lambda i: (0, 0, 0, 0)),
                pl.BlockSpec((KH * KW, Cout, C), lambda i: (0, 0, 0)),
                pl.BlockSpec((Cout, 1), lambda i: (0, 0)),
            ],
            out_specs=pl.BlockSpec((Cout, rows), lambda i: (0, 0)),
        ),
        compiler_params=pltpu.CompilerParams(
            dimension_semantics=("arbitrary",),
            vmem_limit_bytes=32 * 1024 * 1024,
        ),
        cost_estimate=pl.CostEstimate(
            flops=int(flops), transcendentals=0, bytes_accessed=bytes_accessed),
    )(x, fused_w, bias)

    # (Cout, N*Ho*Wo) -> (N, Cout, Ho, Wo)  (pure relabel + transpose in XLA)
    out = out2d.reshape(Cout, N, Ho, Wo)
    return jnp.transpose(out, (1, 0, 2, 3))


def _reference_separable_conv2d(x_nchw, dw_weight, pw_weight, pw_bias,
                                stride, padding, dilation):
    """Pure-JAX reference using lax.conv_general_dilated (matches torch semantics)."""
    C = x_nchw.shape[1]
    y = jax.lax.conv_general_dilated(
        x_nchw, dw_weight,
        window_strides=stride,
        padding=[(padding[0], padding[0]), (padding[1], padding[1])],
        rhs_dilation=dilation,
        feature_group_count=C,
        dimension_numbers=("NCHW", "OIHW", "NCHW"),
    )
    y = jax.lax.conv_general_dilated(
        y, pw_weight,
        window_strides=(1, 1),
        padding=[(0, 0), (0, 0)],
        dimension_numbers=("NCHW", "OIHW", "NCHW"),
    )
    return y + pw_bias[None, :, None, None]


if __name__ == "__main__":
    # module config: SeparableConv2d(in_channels=4, out_channels=8,
    #                                kernel_size=3, stride=1, padding=1, bias=True)
    N, C, H, W = 2, 4, 16, 16
    Cout, K = 8, 3
    stride, padding, dilation = (1, 1), (1, 1), (1, 1)

    key = jax.random.PRNGKey(0)
    kx, kd, kp, kb = jax.random.split(key, 4)
    x = jax.random.normal(kx, (N, C, H, W), dtype=jnp.float32)
    dw_weight = jax.random.normal(kd, (C, 1, K, K), dtype=jnp.float32) * 0.1
    pw_weight = jax.random.normal(kp, (Cout, C, 1, 1), dtype=jnp.float32) * 0.1
    pw_bias = jax.random.normal(kb, (Cout,), dtype=jnp.float32) * 0.1

    out = separable_conv2d(x, dw_weight, pw_weight, pw_bias,
                           stride=stride, padding=padding, dilation=dilation)
    out = jax.block_until_ready(out)

    ref = _reference_separable_conv2d(x, dw_weight, pw_weight, pw_bias,
                                      stride, padding, dilation)
    ref = jax.block_until_ready(ref)

    assert out.shape == (N, Cout, H, W), out.shape
    assert jnp.allclose(out, ref, atol=1e-4, rtol=1e-4), (
        float(jnp.max(jnp.abs(out - ref))))
    print("KERNEL_OK")
</pallas_src>

<mosaic_0001>
module attributes {stable_mosaic.version = 11 : i64} {
  func.func @_sepconv_kernel(%arg0: i32, %arg1: memref<2x18x18x4xf32, #tpu.memory_space<vmem>>, %arg2: memref<9x8x4xf32, #tpu.memory_space<vmem>>, %arg3: memref<8x1xf32, #tpu.memory_space<vmem>>, %arg4: memref<8x512xf32, #tpu.memory_space<vmem>>) attributes {dimension_semantics = [#tpu.dimension_semantics<arbitrary>], iteration_bounds = array<i64: 1>, scalar_prefetch = 0 : i64, scratch_operands = 0 : i64, tpu.core_type = #tpu.core_type<tc>, window_params = [{pipeline_mode = #tpu.pipeline_mode<synchronous>, transform_indices = @transform_0, window_bounds = array<i64: 2, 18, 18, 4>}, {pipeline_mode = #tpu.pipeline_mode<synchronous>, transform_indices = @transform_1, window_bounds = array<i64: 9, 8, 4>}, {pipeline_mode = #tpu.pipeline_mode<synchronous>, transform_indices = @transform_2, window_bounds = array<i64: 8, 1>}, {pipeline_mode = #tpu.pipeline_mode<synchronous>, transform_indices = @transform_3, window_bounds = array<i64: 8, 512>}]} {
    %c0 = arith.constant 0 : index
    %c0_0 = arith.constant 0 : index
    %c0_1 = arith.constant 0 : index
    %c0_2 = arith.constant 0 : index
    %0 = vector.load %arg1[%c0, %c0_0, %c0_1, %c0_2] : memref<2x18x18x4xf32, #tpu.memory_space<vmem>>, vector<2x18x18x4xf32>
    %cst = arith.constant 0.000000e+00 : f32
    %1 = vector.broadcast %cst : f32 to vector<8x512xf32>
    %2 = vector.extract_strided_slice %0 {offsets = [0, 0, 0, 0], sizes = [2, 16, 16, 4], strides = [1, 1, 1, 1]} : vector<2x18x18x4xf32> to vector<2x16x16x4xf32>
    %3 = vector.shape_cast %2 : vector<2x16x16x4xf32> to vector<512x4xf32>
    %c0_3 = arith.constant 0 : index
    %c0_4 = arith.constant 0 : index
    %c0_5 = arith.constant 0 : index
    %4 = vector.load %arg2[%c0_3, %c0_4, %c0_5] : memref<9x8x4xf32, #tpu.memory_space<vmem>>, vector<1x8x4xf32>
    %5 = vector.shape_cast %4 : vector<1x8x4xf32> to vector<8x4xf32>
    %cst_6 = arith.constant dense<0.000000e+00> : vector<8x512xf32>
    %6 = tpu.matmul %5, %3, %cst_6 {dimension_numbers = #tpu.dot_dimension_numbers<[1], [1], [0], [0], [0, 0, 1, 0], [], []>} : vector<8x4xf32>, vector<512x4xf32>, vector<8x512xf32> -> vector<8x512xf32>
    %7 = arith.addf %1, %6 : vector<8x512xf32>
    %8 = vector.extract_strided_slice %0 {offsets = [0, 0, 1, 0], sizes = [2, 16, 16, 4], strides = [1, 1, 1, 1]} : vector<2x18x18x4xf32> to vector<2x16x16x4xf32>
    %9 = vector.shape_cast %8 : vector<2x16x16x4xf32> to vector<512x4xf32>
    %c1 = arith.constant 1 : index
    %c0_7 = arith.constant 0 : index
    %c0_8 = arith.constant 0 : index
    %10 = vector.load %arg2[%c1, %c0_7, %c0_8] : memref<9x8x4xf32, #tpu.memory_space<vmem>>, vector<1x8x4xf32>
    %11 = vector.shape_cast %10 : vector<1x8x4xf32> to vector<8x4xf32>
    %cst_9 = arith.constant dense<0.000000e+00> : vector<8x512xf32>
    %12 = tpu.matmul %11, %9, %cst_9 {dimension_numbers = #tpu.dot_dimension_numbers<[1], [1], [0], [0], [0, 0, 1, 0], [], []>} : vector<8x4xf32>, vector<512x4xf32>, vector<8x512xf32> -> vector<8x512xf32>
    %13 = arith.addf %7, %12 : vector<8x512xf32>
    %14 = vector.extract_strided_slice %0 {offsets = [0, 0, 2, 0], sizes = [2, 16, 16, 4], strides = [1, 1, 1, 1]} : vector<2x18x18x4xf32> to vector<2x16x16x4xf32>
    %15 = vector.shape_cast %14 : vector<2x16x16x4xf32> to vector<512x4xf32>
    %c2 = arith.constant 2 : index
    %c0_10 = arith.constant 0 : index
    %c0_11 = arith.constant 0 : index
    %16 = vector.load %arg2[%c2, %c0_10, %c0_11] : memref<9x8x4xf32, #tpu.memory_space<vmem>>, vector<1x8x4xf32>
    %17 = vector.shape_cast %16 : vector<1x8x4xf32> to vector<8x4xf32>
    %cst_12 = arith.constant dense<0.000000e+00> : vector<8x512xf32>
    %18 = tpu.matmul %17, %15, %cst_12 {dimension_numbers = #tpu.dot_dimension_numbers<[1], [1], [0], [0], [0, 0, 1, 0], [], []>} : vector<8x4xf32>, vector<512x4xf32>, vector<8x512xf32> -> vector<8x512xf32>
    %19 = arith.addf %13, %18 : vector<8x512xf32>
    %20 = vector.extract_strided_slice %0 {offsets = [0, 1, 0, 0], sizes = [2, 16, 16, 4], strides = [1, 1, 1, 1]} : vector<2x18x18x4xf32> to vector<2x16x16x4xf32>
    %21 = vector.shape_cast %20 : vector<2x16x16x4xf32> to vector<512x4xf32>
    %c3 = arith.constant 3 : index
    %c0_13 = arith.constant 0 : index
    %c0_14 = arith.constant 0 : index
    %22 = vector.load %arg2[%c3, %c0_13, %c0_14] : memref<9x8x4xf32, #tpu.memory_space<vmem>>, vector<1x8x4xf32>
    %23 = vector.shape_cast %22 : vector<1x8x4xf32> to vector<8x4xf32>
    %cst_15 = arith.constant dense<0.000000e+00> : vector<8x512xf32>
    %24 = tpu.matmul %23, %21, %cst_15 {dimension_numbers = #tpu.dot_dimension_numbers<[1], [1], [0], [0], [0, 0, 1, 0], [], []>} : vector<8x4xf32>, vector<512x4xf32>, vector<8x512xf32> -> vector<8x512xf32>
    %25 = arith.addf %19, %24 : vector<8x512xf32>
    %26 = vector.extract_strided_slice %0 {offsets = [0, 1, 1, 0], sizes = [2, 16, 16, 4], strides = [1, 1, 1, 1]} : vector<2x18x18x4xf32> to vector<2x16x16x4xf32>
    %27 = vector.shape_cast %26 : vector<2x16x16x4xf32> to vector<512x4xf32>
    %c4 = arith.constant 4 : index
    %c0_16 = arith.constant 0 : index
    %c0_17 = arith.constant 0 : index
    %28 = vector.load %arg2[%c4, %c0_16, %c0_17] : memref<9x8x4xf32, #tpu.memory_space<vmem>>, vector<1x8x4xf32>
    %29 = vector.shape_cast %28 : vector<1x8x4xf32> to vector<8x4xf32>
    %cst_18 = arith.constant dense<0.000000e+00> : vector<8x512xf32>
    %30 = tpu.matmul %29, %27, %cst_18 {dimension_numbers = #tpu.dot_dimension_numbers<[1], [1], [0], [0], [0, 0, 1, 0], [], []>} : vector<8x4xf32>, vector<512x4xf32>, vector<8x512xf32> -> vector<8x512xf32>
    %31 = arith.addf %25, %30 : vector<8x512xf32>
    %32 = vector.extract_strided_slice %0 {offsets = [0, 1, 2, 0], sizes = [2, 16, 16, 4], strides = [1, 1, 1, 1]} : vector<2x18x18x4xf32> to vector<2x16x16x4xf32>
    %33 = vector.shape_cast %32 : vector<2x16x16x4xf32> to vector<512x4xf32>
    %c5 = arith.constant 5 : index
    %c0_19 = arith.constant 0 : index
    %c0_20 = arith.constant 0 : index
    %34 = vector.load %arg2[%c5, %c0_19, %c0_20] : memref<9x8x4xf32, #tpu.memory_space<vmem>>, vector<1x8x4xf32>
    %35 = vector.shape_cast %34 : vector<1x8x4xf32> to vector<8x4xf32>
    %cst_21 = arith.constant dense<0.000000e+00> : vector<8x512xf32>
    %36 = tpu.matmul %35, %33, %cst_21 {dimension_numbers = #tpu.dot_dimension_numbers<[1], [1], [0], [0], [0, 0, 1, 0], [], []>} : vector<8x4xf32>, vector<512x4xf32>, vector<8x512xf32> -> vector<8x512xf32>
    %37 = arith.addf %31, %36 : vector<8x512xf32>
    %38 = vector.extract_strided_slice %0 {offsets = [0, 2, 0, 0], sizes = [2, 16, 16, 4], strides = [1, 1, 1, 1]} : vector<2x18x18x4xf32> to vector<2x16x16x4xf32>
    %39 = vector.shape_cast %38 : vector<2x16x16x4xf32> to vector<512x4xf32>
    %c6 = arith.constant 6 : index
    %c0_22 = arith.constant 0 : index
    %c0_23 = arith.constant 0 : index
    %40 = vector.load %arg2[%c6, %c0_22, %c0_23] : memref<9x8x4xf32, #tpu.memory_space<vmem>>, vector<1x8x4xf32>
    %41 = vector.shape_cast %40 : vector<1x8x4xf32> to vector<8x4xf32>
    %cst_24 = arith.constant dense<0.000000e+00> : vector<8x512xf32>
    %42 = tpu.matmul %41, %39, %cst_24 {dimension_numbers = #tpu.dot_dimension_numbers<[1], [1], [0], [0], [0, 0, 1, 0], [], []>} : vector<8x4xf32>, vector<512x4xf32>, vector<8x512xf32> -> vector<8x512xf32>
    %43 = arith.addf %37, %42 : vector<8x512xf32>
    %44 = vector.extract_strided_slice %0 {offsets = [0, 2, 1, 0], sizes = [2, 16, 16, 4], strides = [1, 1, 1, 1]} : vector<2x18x18x4xf32> to vector<2x16x16x4xf32>
    %45 = vector.shape_cast %44 : vector<2x16x16x4xf32> to vector<512x4xf32>
    %c7 = arith.constant 7 : index
    %c0_25 = arith.constant 0 : index
    %c0_26 = arith.constant 0 : index
    %46 = vector.load %arg2[%c7, %c0_25, %c0_26] : memref<9x8x4xf32, #tpu.memory_space<vmem>>, vector<1x8x4xf32>
    %47 = vector.shape_cast %46 : vector<1x8x4xf32> to vector<8x4xf32>
    %cst_27 = arith.constant dense<0.000000e+00> : vector<8x512xf32>
    %48 = tpu.matmul %47, %45, %cst_27 {dimension_numbers = #tpu.dot_dimension_numbers<[1], [1], [0], [0], [0, 0, 1, 0], [], []>} : vector<8x4xf32>, vector<512x4xf32>, vector<8x512xf32> -> vector<8x512xf32>
    %49 = arith.addf %43, %48 : vector<8x512xf32>
    %50 = vector.extract_strided_slice %0 {offsets = [0, 2, 2, 0], sizes = [2, 16, 16, 4], strides = [1, 1, 1, 1]} : vector<2x18x18x4xf32> to vector<2x16x16x4xf32>
    %51 = vector.shape_cast %50 : vector<2x16x16x4xf32> to vector<512x4xf32>
    %c8 = arith.constant 8 : index
    %c0_28 = arith.constant 0 : index
    %c0_29 = arith.constant 0 : index
    %52 = vector.load %arg2[%c8, %c0_28, %c0_29] : memref<9x8x4xf32, #tpu.memory_space<vmem>>, vector<1x8x4xf32>
    %53 = vector.shape_cast %52 : vector<1x8x4xf32> to vector<8x4xf32>
    %cst_30 = arith.constant dense<0.000000e+00> : vector<8x512xf32>
    %54 = tpu.matmul %53, %51, %cst_30 {dimension_numbers = #tpu.dot_dimension_numbers<[1], [1], [0], [0], [0, 0, 1, 0], [], []>} : vector<8x4xf32>, vector<512x4xf32>, vector<8x512xf32> -> vector<8x512xf32>
    %55 = arith.addf %49, %54 : vector<8x512xf32>
    %c0_31 = arith.constant 0 : index
    %c0_32 = arith.constant 0 : index
    %56 = vector.load %arg3[%c0_31, %c0_32] : memref<8x1xf32, #tpu.memory_space<vmem>>, vector<8x1xf32>
    %57 = vector.broadcast %56 : vector<8x1xf32> to vector<8x512xf32>
    %58 = arith.addf %55, %57 : vector<8x512xf32>
    %c0_33 = arith.constant 0 : index
    %c0_34 = arith.constant 0 : index
    %59 = vector.load %arg4[%c0_33, %c0_34] : memref<8x512xf32, #tpu.memory_space<vmem>>, vector<8x512xf32>
    tpu.vector_store %arg4[%c0_33, %c0_34], %58 {strides = array<i32>} : memref<8x512xf32, #tpu.memory_space<vmem>>, vector<8x512xf32>,
    return
  }
  func.func @transform_0(%arg0: i32) -> (i32, i32, i32, i32) {
    %c0_i32 = arith.constant 0 : i32
    %c0_i32_0 = arith.constant 0 : i32
    %c0_i32_1 = arith.constant 0 : i32
    %c0_i32_2 = arith.constant 0 : i32
    %c0_i32_3 = arith.constant 0 : i32
    return %c0_i32, %c0_i32_0, %c0_i32_1, %c0_i32_2 : i32, i32, i32, i32
  }
  func.func @transform_1(%arg0: i32) -> (i32, i32, i32) {
    %c0_i32 = arith.constant 0 : i32
    %c0_i32_0 = arith.constant 0 : i32
    %c0_i32_1 = arith.constant 0 : i32
    %c0_i32_2 = arith.constant 0 : i32
    return %c0_i32, %c0_i32_0, %c0_i32_1 : i32, i32, i32
  }
  func.func @transform_2(%arg0: i32) -> (i32, i32) {
    %c0_i32 = arith.constant 0 : i32
    %c0_i32_0 = arith.constant 0 : i32
    %c0_i32_1 = arith.constant 0 : i32
    return %c0_i32, %c0_i32_0 : i32, i32
  }
  func.func @transform_3(%arg0: i32) -> (i32, i32) {
    %c0_i32 = arith.constant 0 : i32
    %c0_i32_0 = arith.constant 0 : i32
    %c0_i32_1 = arith.constant 0 : i32
    return %c0_i32, %c0_i32_0 : i32, i32
  }
}

</mosaic_0001>

<bundles_post_ra>
// kernel: tpu_custom_call.1
= control target key start
LH: loop header
LB: loop body
LE: loop exit
PB: predicated region body
PF: predicated region fallthrough
CT: control target
= control target key end

     0   :  { %vm220_vm0 = vcmask 1046528   ;;  %vm383_vm1 = vcmask 31744   ;;  %s5156_s0 = inlined_call_operand.vmem [shape: f32[2,18,18,4], index: 0, kind: input, shape index: {}]   ;;  %s5157_s1 = inlined_call_operand.vmem [shape: f32[9,8,4], index: 1, kind: input, shape index: {}]   ;;  %s5158_s2 = inlined_call_operand.vmem [shape: f32[8,1], index: 2, kind: input, shape index: {}]   ;;  %s5159_s3 = inlined_call_operand.hbm [shape: f32[8,512], index: 3, kind: output, shape index: {}]  }
   0x1   :  { %v2578_v0 = vld [vmem:[%s5156_s0 + $0xb0] sm:$0xff]  ;;  %v2583_v1 = vld [vmem:[%s5156_s0 + $0xb8] sm:$0x3]  ;;  %v2602_v8 = vld [vmem:[%s5156_s0 + $0x260] sm:$0xff] }
   0x2   :  { %5435 = vst [vmem:[#allocation5_spill] sm:$0xff] %v2583_v1  ;;  %v2588_v2 = vld [vmem:[%s5156_s0 + $0x170] sm:$0xff]  ;;  %v257_v3 = vrot.slane %v2578_v0, 1  ;;  %v259_v4 = vrot.slane %v2583_v1, 1  ;;  %v2595_v5 = vld [vmem:[%s5156_s0 + $0x178] sm:$0x3] }
   0x3   :  { %5436 = vst [vmem:[#allocation6_spill] sm:$0xff] %v2595_v5  ;;  %v297_v6 = vrot.slane %v2588_v2, 1  ;;  %v299_v7 = vrot.slane %v2595_v5, 1  ;;  %v2607_v9 = vld [vmem:[%s5156_s0 + $0x268] sm:$0x3]  ;;  %v2612_v10 = vld [vmem:[%s5156_s0 + $0x320] sm:$0xff] }
   0x4   :  { %5437 = vst [vmem:[#allocation7_spill] sm:$0xff] %v2607_v9  ;;  %v2615_v11 = vsel %vm220_vm0, %v257_v3, %v259_v4  ;;  %v337_v12 = vrot.slane %v2602_v8, 1  ;;  %v339_v13 = vrot.slane %v2607_v9, 1  ;;  %v2622_v14 = vld [vmem:[%s5156_s0 + $0x328] sm:$0x3]  ;;  %v377_v17 = vrot.slane %v2612_v10, 1 }
   0x5   :  { %5438 = vst [vmem:[#allocation8_spill] sm:$0xff] %v2615_v11  ;;  %v2627_v15 = vld [vmem:[%s5156_s0 + $0xa8] sm:$0xff]  ;;  %1849 = vmatpush.xpose.msk.msra.mxu0 %vm383_vm1, %v2615_v11  ;;  %v2632_v16 = vsel %vm220_vm0, %v297_v6, %v299_v7  ;;  %v379_v18 = vrot.slane %v2622_v14, 1  ;;  %v2644_v20 = vld [vmem:[%s5156_s0 + $0x258] sm:$0xff]  ;;  %v2667_v27 = vld [vmem:[%s5156_s0 + $0xa0] sm:$0x3] }
   0x6   :  { %5439 = vst [vmem:[#allocation9_spill] sm:$0xff] %v2622_v14  ;;  %v2639_v19 = vld [vmem:[%s5156_s0 + $0x168] sm:$0xff]  ;;  %v2649_v21 = vld [vmem:[%s5156_s0 + $0x318] sm:$0xff]  ;;  %1866 = vmatpush.xpose.msk.msra.mxu1 %vm383_vm1, %v2632_v16  ;;  %v2654_v22 = vsel %vm220_vm0, %v337_v12, %v339_v13  ;;  %v256_v23 = vrot.slane %v2627_v15, 1  ;;  %v336_v25 = vrot.slane %v2644_v20, 1  ;;  %v254_v31 = vrot.slane %v2667_v27, 1 }
   0x7   :  { %5440 = vst [vmem:[#allocation10_spill] sm:$0xff] %v2632_v16  ;;  %v296_v24 = vrot.slane %v2639_v19, 1  ;;  %v2662_v26 = vld [vmem:[%s5156_s0 + $0x98] sm:$0xff]  ;;  %1883 = vmatpush.xpose.msk.msra.mxu2 %vm383_vm1, %v2654_v22  ;;  %v2672_v28 = vsel %vm220_vm0, %v377_v17, %v379_v18  ;;  %v376_v29 = vrot.slane %v2649_v21, 1  ;;  %v2685_v33 = vld [vmem:[%s5156_s0 + $0x160] sm:$0x3] }
   0x8   :  { %5441 = vst [vmem:[#allocation11_spill] sm:$0xff] %v2654_v22  ;;  %v252_v30 = vrot.slane %v2662_v26, 1  ;;  %v2680_v32 = vld [vmem:[%s5156_s0 + $0x158] sm:$0xff]  ;;  %1900 = vmatpush.xpose.msk.msra.mxu3 %vm383_vm1, %v2672_v28  ;;  %v2690_v34 = vsel %vm220_vm0, %v256_v23, %v257_v3  ;;  %v2696_v36 = vsel %vm220_vm0, %v336_v25, %v337_v12  ;;  %v2702_v38 = vld [vmem:[%s5156_s0 + $0x248] sm:$0xff]  ;;  %v2707_v39 = vld [vmem:[%s5156_s0 + $0x250] sm:$0x3] }
   0x9   :  { %5442 = vst [vmem:[#allocation12_spill] sm:$0xff] %v2667_v27  ;;  %v2693_v35 = vsel %vm220_vm0, %v296_v24, %v297_v6  ;;  %v292_v37 = vrot.slane %v2680_v32, 1  ;;  %v2712_v40 = vld [vmem:[%s5156_s0 + $0x308] sm:$0xff]  ;;  %1850 = vmatpush.xpose.msk.msra.mxu0 %vm383_vm1, %v2690_v34  ;;  %v2717_v41 = vsel %vm220_vm0, %v376_v29, %v377_v17  ;;  %v294_v43 = vrot.slane %v2685_v33, 1  ;;  %v2727_v45 = vld [vmem:[%s5156_s0 + $0x310] sm:$0x3] }
   0xa   :  { %5443 = vst [vmem:[#allocation13_spill] sm:$0xff] %v2672_v28  ;;  %v2720_v42 = vsel %vm220_vm0, %v252_v30, %v254_v31  ;;  %v332_v44 = vrot.slane %v2702_v38, 1  ;;  %v2732_v46 = vld [vmem:[%s5156_s0 + $0x90] sm:$0xff]  ;;  %1867 = vmatpush.xpose.msk.msra.mxu1 %vm383_vm1, %v2693_v35  ;;  %v334_v48 = vrot.slane %v2707_v39, 1  ;;  %v372_v49 = vrot.slane %v2712_v40, 1  ;;  %v2748_v52 = vld [vmem:[%s5156_s0 + $0x240] sm:$0xff] }
   0xb   :  { %5444 = vst [vmem:[#allocation14_spill] sm:$0xff] %v2685_v33  ;;  %v2737_v47 = vld [vmem:[%s5156_s0 + $0x150] sm:$0xff]  ;;  %v374_v50 = vrot.slane %v2727_v45, 1  ;;  %v251_v51 = vrot.slane %v2732_v46, 1  ;;  %v2753_v53 = vld [vmem:[%s5156_s0 + $0x300] sm:$0xff]  ;;  %1884 = vmatpush.xpose.msk.msra.mxu2 %vm383_vm1, %v2696_v36  ;;  %v2758_v54 = vsel %vm220_vm0, %v292_v37, %v294_v43  ;;  %v331_v59 = vrot.slane %v2748_v52, 1 }
   0xc   :  { %5445 = vst [vmem:[#allocation15_spill] sm:$0xff] %v2690_v34  ;;  %v291_v55 = vrot.slane %v2737_v47, 1  ;;  %v2764_v56 = vld [vmem:[%s5156_s0 + $0x80] sm:$0xff]  ;;  %v2769_v57 = vld [vmem:[%s5156_s0 + $0x88] sm:$0x3]  ;;  %1901 = vmatpush.xpose.msk.msra.mxu3 %vm383_vm1, %v2717_v41  ;;  %v2774_v58 = vsel %vm220_vm0, %v332_v44, %v334_v48  ;;  %v371_v63 = vrot.slane %v2753_v53, 1 }
   0xd   :  { %5446 = vst [vmem:[#allocation16_spill] sm:$0xff] %v2693_v35  ;;  %v2780_v60 = vld [vmem:[%s5156_s0 + $0x140] sm:$0xff]  ;;  %v2785_v61 = vld [vmem:[%s5156_s0 + $0x148] sm:$0x3]  ;;  %1851 = vmatpush.xpose.msk.msra.mxu0 %vm383_vm1, %v2720_v42  ;;  %v2790_v62 = vsel %vm220_vm0, %v372_v49, %v374_v50  ;;  %v2796_v3 = vld [vmem:[%s5156_s0 + $0x230] sm:$0xff]  ;;  %v2806_v6 = vsel %vm220_vm0, %v251_v51, %v252_v30  ;;  %v247_v7 = vrot.slane %v2764_v56, 1  ;;  %v2835_v29 = vsel %vm220_vm0, %v331_v59, %v332_v44 }
   0xe   :  { %5447 = vst [vmem:[#allocation17_spill] sm:$0xff] %v2696_v36  ;;  %v2801_v4 = vld [vmem:[%s5156_s0 + $0x238] sm:$0x3]  ;;  %1868 = vmatpush.xpose.msk.msra.mxu1 %vm383_vm1, %v2758_v54  ;;  %v249_v12 = vrot.slane %v2769_v57, 1  ;;  %v2813_v13 = vld [vmem:[%s5156_s0 + $0x2f0] sm:$0xff]  ;;  %v2823_v18 = vsel %vm220_vm0, %v291_v55, %v292_v37  ;;  %v287_v23 = vrot.slane %v2780_v60, 1  ;;  %v2847_v43 = vsel %vm220_vm0, %v371_v63, %v372_v49 }
   0xf   :  { %5448 = vst [vmem:[#allocation18_spill] sm:$0xff] %v2707_v39  ;;  %v2818_v17 = vld [vmem:[%s5156_s0 + $0x2f8] sm:$0x3]  ;;  %1885 = vmatpush.xpose.msk.msra.mxu2 %vm383_vm1, %v2774_v58  ;;  %v289_v24 = vrot.slane %v2785_v61, 1  ;;  %v327_v30 = vrot.slane %v2796_v3, 1  ;;  %v329_v31 = vrot.slane %v2801_v4, 1 }
  0x10   :  { %5449 = vst [vmem:[#allocation19_spill] sm:$0xff] %v2717_v41  ;;  %v2830_v25 = vld [vmem:[%s5156_s0 + $0x78] sm:$0xff]  ;;  %1902 = vmatpush.xpose.msk.msra.mxu3 %vm383_vm1, %v2790_v62  ;;  %v367_v48 = vrot.slane %v2813_v13, 1  ;;  %v369_v44 = vrot.slane %v2818_v17, 1  ;;  %v2854_v50 = vld [vmem:[%s5156_s0 + $0x228] sm:$0xff]  ;;  %v2859_v51 = vsel %vm220_vm0, %v247_v7, %v249_v12  ;;  %v2942_v35 = vld [vmem:[%s5156_s0 + $0x60] sm:$0xff] }
  0x11   :  { %5450 = vst [vmem:[#allocation20_spill] sm:$0xff] %v2720_v42  ;;  %v2842_v37 = vld [vmem:[%s5156_s0 + $0x138] sm:$0xff]  ;;  %1852 = vmatpush.xpose.msk.msra.mxu0 %vm383_vm1, %v2806_v6  ;;  %v246_v55 = vrot.slane %v2830_v25, 1  ;;  %v2865_v49 = vld [vmem:[%s5156_s0 + $0x2e8] sm:$0xff]  ;;  %v2870_v59 = vsel %vm220_vm0, %v287_v23, %v289_v24  ;;  %v326_v24 = vrot.slane %v2854_v50, 1  ;;  %v3004_v11 = vld [vmem:[%s5156_s0 + $0x110] sm:$0xff] }
  0x12   :  { %5451 = vst [vmem:[#allocation21_spill] sm:$0xff] %v2727_v45  ;;  %1869 = vmatpush.xpose.msk.msra.mxu1 %vm383_vm1, %v2823_v18  ;;  %v286_v63 = vrot.slane %v2842_v37, 1  ;;  %v2876_v12 = vld [vmem:[%s5156_s0 + $0x68] sm:$0xff]  ;;  %v2925_v41 = vld [vmem:[%s5156_s0 + $0x2d8] sm:$0xff]  ;;  %v2930_v36 = vld [vmem:[%s5156_s0 + $0x2e0] sm:$0x3] }
  0x13   :  { %5452 = vst [vmem:[#allocation22_spill] sm:$0xff] %v2758_v54  ;;  %1886 = vmatpush.xpose.msk.msra.mxu2 %vm383_vm1, %v2835_v29  ;;  %v2913_v54 = vld [vmem:[%s5156_s0 + $0x220] sm:$0x3]  ;;  %v2947_v34 = vsel %vm220_vm0, %v326_v24, %v327_v30  ;;  %v2966_v24 = vld [vmem:[%s5156_s0 + $0x210] sm:$0xff]  ;;  %v3133_v33 = vld [vmem:[%s5156_s0 + $0x1e8] sm:$0xff] }
  0x14   :  { %5453 = vst [vmem:[#allocation23_spill] sm:$0xff] %v2769_v57  ;;  %1903 = vmatpush.xpose.msk.msra.mxu3 %vm383_vm1, %v2847_v43  ;;  %v3138_v27 = vld [vmem:[%s5156_s0 + $0x1f0] sm:$0x3]  ;;  %v3149_v14 = vld [vmem:[%s5156_s0 + $0x2a8] sm:$0xff] }
  0x15   :  { %5454 = vst [vmem:[#allocation24_spill] sm:$0xff] %v2774_v58  ;;  %1853 = vmatpush.xpose.msk.msra.mxu0 %vm383_vm1, %v2859_v51  ;;  %v2908_v58 = vld [vmem:[%s5156_s0 + $0x218] sm:$0xff]  ;;  %v3154_v9 = vld [vmem:[%s5156_s0 + $0x2b0] sm:$0x3] }
  0x16   :  { %5455 = vst [vmem:[#allocation25_spill] sm:$0xff] %v2785_v61  ;;  %1870 = vmatpush.xpose.msk.msra.mxu1 %vm383_vm1, %v2870_v59 }
  0x17   :  { %5456 = vst [vmem:[#allocation26_spill] sm:$0xff] %v2790_v62  ;;  %v2897_v62 = vld [vmem:[%s5156_s0 + $0x130] sm:$0x3] }
  0x18   :  { %5457 = vst [vmem:[#allocation27_spill] sm:$0xff] %v2801_v4  ;;  %v3042_v4 = vld [vmem:[%s5156_s0 + $0x2c8] sm:$0x3] }
  0x19   :  { %5458 = vst [vmem:[#allocation28_spill] sm:$0xff] %v2806_v6  ;;  %v2892_v6 = vld [vmem:[%s5156_s0 + $0x128] sm:$0xff] }
  0x1a   :  { %5459 = vst [vmem:[#allocation29_spill] sm:$0xff] %v2818_v17  ;;  %v3037_v17 = vld [vmem:[%s5156_s0 + $0x2c0] sm:$0xff] }
  0x1b   :  { %5460 = vst [vmem:[#allocation30_spill] sm:$0xff] %v2823_v18  ;;  %v2881_v18 = vld [vmem:[%s5156_s0 + $0x70] sm:$0x3] }
  0x1c   :  { %5461 = vst [vmem:[#allocation31_spill] sm:$0xff] %v2835_v29  ;;  %v2886_v29 = vsel %vm220_vm0, %v327_v30, %v329_v31  ;;  %v366_v31 = vrot.slane %v2865_v49, 1  ;;  %v244_v42 = vrot.slane %v2881_v18, 1  ;;  %v364_v30 = vrot.slane %v2930_v36, 1 }
  0x1d   :  { %5462 = vst [vmem:[#allocation32_spill] sm:$0xff] %v2847_v43  ;;  %v2902_v43 = vsel %vm220_vm0, %v367_v48, %v369_v44  ;;  %v242_v44 = vrot.slane %v2876_v12, 1  ;;  %1887 = vmatpush.xpose.msk.msra.mxu2 %vm383_vm1, %v2886_v29 }
  0x1e   :  { %5463 = vst [vmem:[#allocation33_spill] sm:$0xff] %v2859_v51  ;;  %v2918_v51 = vsel %vm220_vm0, %v246_v55, %v247_v7  ;;  %v2935_v7 = vsel %vm220_vm0, %v286_v63, %v287_v23  ;;  %v282_v55 = vrot.slane %v2892_v6, 1  ;;  %1904 = vmatpush.xpose.msk.msra.mxu3 %vm383_vm1, %v2902_v43  ;;  %v324_v23 = vrot.slane %v2913_v54, 1  ;;  %v2954_v63 = vld [vmem:[%s5156_s0 + $0x120] sm:$0xff] }
  0x1f   :  { %5464 = vst [vmem:[#allocation34_spill] sm:$0xff] %v2870_v59  ;;  %v284_v59 = vrot.slane %v2897_v62, 1  ;;  %1854 = vmatpush.xpose.msk.msra.mxu0 %vm383_vm1, %v2918_v51  ;;  %v2959_v28 = vsel %vm220_vm0, %v366_v31, %v367_v48  ;;  %1871 = vmatpush.xpose.msk.msra.mxu1 %vm383_vm1, %v2935_v7  ;;  %v2971_v22 = vsel %vm220_vm0, %v242_v44, %v244_v42  ;;  %v2977_v48 = vld [vmem:[%s5156_s0 + $0x2d0] sm:$0xff]  ;;  %v281_v16 = vrot.slane %v2954_v63, 1 }
  0x20   :  { %5465 = vst [vmem:[#allocation35_spill] sm:$0xff] %v2881_v18  ;;  %v2988_v42 = vld [vmem:[%s5156_s0 + $0x50] sm:$0xff] }
  0x21   :  { %5466 = vst [vmem:[#allocation36_spill] sm:$0xff] %v2886_v29  ;;  %v322_v29 = vrot.slane %v2908_v58, 1  ;;  %1888 = vmatpush.xpose.msk.msra.mxu2 %vm383_vm1, %v2947_v34  ;;  %v2982_v31 = vsel %vm220_vm0, %v282_v55, %v284_v59  ;;  %v321_v59 = vrot.slane %v2966_v24, 1 }
  0x22   :  { %5467 = vst [vmem:[#allocation37_spill] sm:$0xff] %v2897_v62  ;;  %1905 = vmatpush.xpose.msk.msra.mxu3 %vm383_vm1, %v2959_v28  ;;  %v3025_v62 = vld [vmem:[%s5156_s0 + $0x208] sm:$0x3] }
  0x23   :  { %5468 = vst [vmem:[#allocation38_spill] sm:$0xff] %v2902_v43  ;;  %v362_v43 = vrot.slane %v2925_v41, 1  ;;  %1855 = vmatpush.xpose.msk.msra.mxu0 %vm383_vm1, %v2971_v22  ;;  %1872 = vmatpush.xpose.msk.msra.mxu1 %vm383_vm1, %v2982_v31  ;;  %v3059_v61 = vsel %vm220_vm0, %v321_v59, %v322_v29  ;;  %v3078_v59 = vld [vmem:[%s5156_s0 + $0x1f8] sm:$0xff] }
  0x24   :  { %5469 = vst [vmem:[#allocation39_spill] sm:$0xff] %v2913_v54  ;;  %v3020_v54 = vld [vmem:[%s5156_s0 + $0x200] sm:$0xff]  ;;  %v316_v45 = vrot.slane %v3078_v59, 1 }
  0x25   :  { %5470 = vst [vmem:[#allocation40_spill] sm:$0xff] %v2918_v51  ;;  %v241_v51 = vrot.slane %v2942_v35, 1 }
  0x26   :  { %5471 = vst [vmem:[#allocation41_spill] sm:$0xff] %v2930_v36  ;;  %v3009_v36 = vld [vmem:[%s5156_s0 + $0x118] sm:$0x3] }
  0x27   :  { %5472 = vst [vmem:[#allocation42_spill] sm:$0xff] %v2935_v7  ;;  %v2993_v7 = vld [vmem:[%s5156_s0 + $0x58] sm:$0x3] }
  0x28   :  { %5473 = vst [vmem:[#allocation43_spill] sm:$0xff] %v2947_v34  ;;  %v2998_v34 = vsel %vm220_vm0, %v322_v29, %v324_v23  ;;  %v361_v23 = vrot.slane %v2977_v48, 1  ;;  %v239_v18 = vrot.slane %v2993_v7, 1  ;;  %v359_v29 = vrot.slane %v3042_v4, 1 }
  0x29   :  { %5474 = vst [vmem:[#allocation44_spill] sm:$0xff] %v2959_v28  ;;  %v3014_v28 = vsel %vm220_vm0, %v362_v43, %v364_v30  ;;  %v237_v30 = vrot.slane %v2988_v42, 1  ;;  %1889 = vmatpush.xpose.msk.msra.mxu2 %vm383_vm1, %v2998_v34 }
  0x2a   :  { %5475 = vst [vmem:[#allocation45_spill] sm:$0xff] %v2971_v22  ;;  %v3030_v22 = vsel %vm220_vm0, %v241_v51, %v242_v44  ;;  %v3047_v51 = vsel %vm220_vm0, %v281_v16, %v282_v55  ;;  %v277_v44 = vrot.slane %v3004_v11, 1  ;;  %1906 = vmatpush.xpose.msk.msra.mxu3 %vm383_vm1, %v3014_v28  ;;  %v319_v16 = vrot.slane %v3025_v62, 1  ;;  %v3066_v55 = vld [vmem:[%s5156_s0 + $0x108] sm:$0xff] }
  0x2b   :  { %5476 = vst [vmem:[#allocation46_spill] sm:$0xff] %v2982_v31  ;;  %v279_v31 = vrot.slane %v3009_v36, 1  ;;  %1856 = vmatpush.xpose.msk.msra.mxu0 %vm383_vm1, %v3030_v22  ;;  %1873 = vmatpush.xpose.msk.msra.mxu1 %vm383_vm1, %v3047_v51 }
  0x2c   :  { %5477 = vst [vmem:[#allocation47_spill] sm:$0xff] %v2993_v7  ;;  %v3054_v7 = vld [vmem:[%s5156_s0 + $0x48] sm:$0xff] }
  0x2d   :  { %5478 = vst [vmem:[#allocation48_spill] sm:$0xff] %v2998_v34  ;;  %v317_v34 = vrot.slane %v3020_v54, 1  ;;  %1890 = vmatpush.xpose.msk.msra.mxu2 %vm383_vm1, %v3059_v61 }
  0x2e   :  { %5479 = vst [vmem:[#allocation49_spill] sm:$0xff] %v3009_v36  ;;  %v3071_v36 = vsel %vm220_vm0, %v361_v23, %v362_v43  ;;  %v3089_v43 = vld [vmem:[%s5156_s0 + $0x2b8] sm:$0xff] }
  0x2f   :  { %5480 = vst [vmem:[#allocation50_spill] sm:$0xff] %v3014_v28  ;;  %v357_v28 = vrot.slane %v3037_v17, 1  ;;  %v3094_v23 = vld [vmem:[%s5156_s0 + $0x38] sm:$0xff]  ;;  %1907 = vmatpush.xpose.msk.msra.mxu3 %vm383_vm1, %v3071_v36  ;;  %v3110_v57 = vsel %vm220_vm0, %v317_v34, %v319_v16  ;;  %v356_v16 = vrot.slane %v3089_v43, 1 }
  0x30   :  { %5481 = vst [vmem:[#allocation51_spill] sm:$0xff] %v3025_v62  ;;  %v3083_v62 = vsel %vm220_vm0, %v237_v30, %v239_v18  ;;  %v276_v18 = vrot.slane %v3066_v55, 1  ;;  %v232_v39 = vrot.slane %v3094_v23, 1 }
  0x31   :  { %5482 = vst [vmem:[#allocation52_spill] sm:$0xff] %v3030_v22  ;;  %v236_v22 = vrot.slane %v3054_v7, 1  ;;  %1857 = vmatpush.xpose.msk.msra.mxu0 %vm383_vm1, %v3083_v62 }
  0x32   :  { %5483 = vst [vmem:[#allocation53_spill] sm:$0xff] %v3042_v4  ;;  %v3105_v4 = vld [vmem:[%s5156_s0 + $0x40] sm:$0x3] }
  0x33   :  { %5484 = vst [vmem:[#allocation54_spill] sm:$0xff] %v3047_v51  ;;  %v3099_v51 = vsel %vm220_vm0, %v277_v44, %v279_v31  ;;  %v3116_v31 = vld [vmem:[%s5156_s0 + $0xf8] sm:$0xff] }
  0x34   :  { %5485 = vst [vmem:[#allocation55_spill] sm:$0xff] %v3059_v61  ;;  %v3121_v61 = vld [vmem:[%s5156_s0 + $0x100] sm:$0x3]  ;;  %1874 = vmatpush.xpose.msk.msra.mxu1 %vm383_vm1, %v3099_v51 }
  0x35   :  { %5486 = vst [vmem:[#allocation56_spill] sm:$0xff] %v3071_v36  ;;  %v3126_v36 = vsel %vm220_vm0, %v357_v28, %v359_v29  ;;  %v3143_v29 = vsel %vm220_vm0, %v236_v22, %v237_v30 }
  0x36   :  { %5487 = vst [vmem:[#allocation57_spill] sm:$0xff] %v3083_v62  ;;  %v234_v62 = vrot.slane %v3105_v4, 1 }
  0x37   :  { %5488 = vst [vmem:[#allocation58_spill] sm:$0xff] %v3099_v51 }
  0x38   :  { %5489 = vst [vmem:[#allocation59_spill] sm:$0xff] %v3105_v4 }
  0x39   :  { %5490 = vst [vmem:[#allocation60_spill] sm:$0xff] %v3110_v57 }
  0x3a   :  { %5491 = vst [vmem:[#allocation61_spill] sm:$0xff] %v3121_v61 }
  0x3b   :  { %5492 = vst [vmem:[#allocation62_spill] sm:$0xff] %v3126_v36 }
  0x3c   :  { %5493 = vst [vmem:[#allocation63_spill] sm:$0xff] %v3133_v33 }
  0x3d   :  { %5494 = vst [vmem:[#allocation64_spill] sm:$0xff] %v3138_v27 }
  0x3e   :  { %5495 = vst [vmem:[#allocation65_spill] sm:$0xff] %v3143_v29 }
  0x3f   :  { %5496 = vst [vmem:[#allocation66_spill] sm:$0xff] %v3149_v14 }
  0x40   :  { %5497 = vst [vmem:[#allocation67_spill] sm:$0xff] %v3154_v9 }
  0x41   :  { %8 = vsyncpa [#allocation3], 0  ;;  %1891 = vmatpush.xpose.msk.msra.mxu2 %vm383_vm1, %v3110_v57  ;;  %v3159_v51 = vsel %vm220_vm0, %v276_v18, %v277_v44  ;;  %v272_v22 = vrot.slane %v3116_v31, 1  ;;  %v274_v30 = vrot.slane %v3121_v61, 1  ;;  %v3166_v4 = vld [vmem:[%s5156_s0 + $0x30] sm:$0xff]  ;;  %1908 = vmatpush.xpose.msk.msra.mxu3 %vm383_vm1, %v3126_v36  ;;  %v3171_v5 = vsel %vm220_vm0, %v316_v45, %v317_v34  ;;  %v3190_v45 = vld [vmem:[%s5156_s0 + $0x1e0] sm:$0xff] }
  0x42   :  { %5498 = vst [vmem:[#allocation68_spill] sm:$0xff] %v3159_v51  ;;  %v312_v57 = vrot.slane %v3133_v33, 1  ;;  %v314_v44 = vrot.slane %v3138_v27, 1  ;;  %v3178_v18 = vld [vmem:[%s5156_s0 + $0xf0] sm:$0xff]  ;;  %1858 = vmatpush.xpose.msk.msra.mxu0 %vm383_vm1, %v3143_v29  ;;  %v3183_v61 = vsel %vm220_vm0, %v356_v16, %v357_v28  ;;  %v352_v36 = vrot.slane %v3149_v14, 1  ;;  %1875 = vmatpush.xpose.msk.msra.mxu1 %vm383_vm1, %v3159_v51  ;;  %v3201_v28 = vld [vmem:[%s5156_s0 + $0x2a0] sm:$0xff] }
  0x43   :  { %5499 = vst [vmem:[#allocation69_spill] sm:$0xff] %v3166_v4  ;;  %v354_v34 = vrot.slane %v3154_v9, 1  ;;  %v3195_v27 = vsel %vm220_vm0, %v232_v39, %v234_v62  ;;  %v231_v29 = vrot.slane %v3166_v4, 1  ;;  %v3206_v16 = vsel %vm220_vm0, %v272_v22, %v274_v30  ;;  %v3212_v62 = vld [vmem:[%s5156_s0 + $0x20] sm:$0xff]  ;;  %v3217_v51 = vld [vmem:[%s5156_s0 + $0x28] sm:$0x3] }
  0x44   :  { %5500 = vst [vmem:[#allocation70_spill] sm:$0xff] %v3171_v5  ;;  %v271_v9 = vrot.slane %v3178_v18, 1  ;;  %v311_v30 = vrot.slane %v3190_v45, 1  ;;  %v3228_v1 = vld [vmem:[%s5156_s0 + $0xe0] sm:$0xff]  ;;  %v3249_v4 = vld [vmem:[%s5156_s0 + $0x1d8] sm:$0x3] }
  0x45   :  { %5501 = vst [vmem:[#allocation71_spill] sm:$0xff] %v3178_v18  ;;  %1892 = vmatpush.xpose.msk.msra.mxu2 %vm383_vm1, %v3171_v5  ;;  %1909 = vmatpush.xpose.msk.msra.mxu3 %vm383_vm1, %v3183_v61  ;;  %v3222_v5 = vsel %vm220_vm0, %v312_v57, %v314_v44  ;;  %v3233_v18 = vld [vmem:[%s5156_s0 + $0xe8] sm:$0x3]  ;;  %v351_v44 = vrot.slane %v3201_v28, 1  ;;  %v3261_v14 = vld [vmem:[%s5156_s0 + $0x290] sm:$0xff]  ;;  %vm806_vm2 = vcmask 1045504  }
  0x46   :  { %5502 = vst [vmem:[#allocation72_spill] sm:$0xff] %v3183_v61  ;;  %1859 = vmatpush.xpose.msk.msra.mxu0 %vm383_vm1, %v3195_v27  ;;  %v3238_v61 = vsel %vm220_vm0, %v352_v36, %v354_v34  ;;  %1876 = vmatpush.xpose.msk.msra.mxu1 %vm383_vm1, %v3206_v16  ;;  %v227_v34 = vrot.slane %v3212_v62, 1  ;;  %v3266_v33 = vld [vmem:[%s5156_s0 + $0x298] sm:$0x3]  ;;  %s1839_s10 = sshll.u32 %s5159_s3, 4  ;;  %s1840_s10 = int_to_ptr.hbm [resolvable:$true] %s1839_s10 }
  0x47   :  { %5503 = vst [vmem:[#allocation73_spill] sm:$0xff] %v3190_v45  ;;  %v3244_v45 = vld [vmem:[%s5156_s0 + $0x1d0] sm:$0xff] }
  0x48   :  { %5504 = vst [vmem:[#allocation74_spill] sm:$0xff] %v3195_v27  ;;  %v3254_v27 = vsel %vm220_vm0, %v231_v29, %v232_v39  ;;  %v3271_v39 = vsel %vm220_vm0, %v271_v9, %v272_v22  ;;  %v267_v29 = vrot.slane %v3228_v1, 1  ;;  %v309_v9 = vrot.slane %v3249_v4, 1  ;;  %v3290_v22 = vld [vmem:[%s5156_s0 + $0xd8] sm:$0xff] }
  0x49   :  { %5505 = vst [vmem:[#allocation75_spill] sm:$0xff] %v3201_v28  ;;  %v229_v28 = vrot.slane %v3217_v51, 1  ;;  %1893 = vmatpush.xpose.msk.msra.mxu2 %vm383_vm1, %v3222_v5  ;;  %1910 = vmatpush.xpose.msk.msra.mxu3 %vm383_vm1, %v3238_v61 }
  0x4a   :  { %5506 = vst [vmem:[#allocation76_spill] sm:$0xff] %v3206_v16  ;;  %v269_v16 = vrot.slane %v3233_v18, 1  ;;  %1860 = vmatpush.xpose.msk.msra.mxu0 %vm383_vm1, %v3254_v27  ;;  %1877 = vmatpush.xpose.msk.msra.mxu1 %vm383_vm1, %v3271_v39 }
  0x4b   :  { %5507 = vst [vmem:[#allocation77_spill] sm:$0xff] %v3212_v62  ;;  %v3283_v62 = vsel %vm220_vm0, %v311_v30, %v312_v57  ;;  %v349_v57 = vrot.slane %v3266_v33, 1  ;;  %v3302_v30 = vld [vmem:[%s5156_s0 + $0x1c8] sm:$0xff] }
  0x4c   :  { %5508 = vst [vmem:[#allocation78_spill] sm:$0xff] %v3217_v51  ;;  %v3278_v51 = vld [vmem:[%s5156_s0 + $0x18] sm:$0xff] }
  0x4d   :  { %5509 = vst [vmem:[#allocation79_spill] sm:$0xff] %v3222_v5  ;;  %v307_v5 = vrot.slane %v3244_v45, 1  ;;  %1894 = vmatpush.xpose.msk.msra.mxu2 %vm383_vm1, %v3283_v62 }
  0x4e   :  { %5510 = vst [vmem:[#allocation80_spill] sm:$0xff] %v3228_v1  ;;  %v3378_v1 = vld [vmem:[%s5156_s0 + $0x280] sm:$0x3] }
  0x4f   :  { %5511 = vst [vmem:[#allocation81_spill] sm:$0xff] %v3233_v18  ;;  %v3295_v18 = vsel %vm220_vm0, %v351_v44, %v352_v36  ;;  %v3313_v36 = vld [vmem:[%s5156_s0 + $0x288] sm:$0xff]  ;;  %v3318_v44 = vsel %vm220_vm0, %v267_v29, %v269_v16  ;;  %v306_v16 = vrot.slane %v3302_v30, 1 }
  0x50   :  { %5512 = vst [vmem:[#allocation82_spill] sm:$0xff] %v3238_v61  ;;  %v347_v61 = vrot.slane %v3261_v14, 1  ;;  %1911 = vmatpush.xpose.msk.msra.mxu3 %vm383_vm1, %v3295_v18  ;;  %1878 = vmatpush.xpose.msk.msra.mxu1 %vm383_vm1, %v3318_v44 }
  0x51   :  { %5513 = vst [vmem:[#allocation83_spill] sm:$0xff] %v3244_v45  ;;  %v3373_v45 = vld [vmem:[%s5156_s0 + $0x278] sm:$0xff] }
  0x52   :  { %5514 = vst [vmem:[#allocation84_spill] sm:$0xff] %v3249_v4  ;;  %v3307_v4 = vsel %vm220_vm0, %v227_v34, %v229_v28  ;;  %v3324_v28 = vld [vmem:[%s5156_s0 + $0x8] sm:$0xff] }
  0x53   :  { %5515 = vst [vmem:[#allocation85_spill] sm:$0xff] %v3254_v27  ;;  %v226_v27 = vrot.slane %v3278_v51, 1  ;;  %1861 = vmatpush.xpose.msk.msra.mxu0 %vm383_vm1, %v3307_v4 }
  0x54   :  { %5516 = vst [vmem:[#allocation86_spill] sm:$0xff] %v3261_v14  ;;  %v3361_v14 = vld [vmem:[%s5156_s0 + $0x1c0] sm:$0x3] }
  0x55   :  { %5517 = vst [vmem:[#allocation87_spill] sm:$0xff] %v3266_v33  ;;  %v266_v33 = vrot.slane %v3290_v22, 1 }
  0x56   :  { %5518 = vst [vmem:[#allocation88_spill] sm:$0xff] %v3271_v39  ;;  %v3329_v39 = vld [vmem:[%s5156_s0 + $0x10] sm:$0x3] }
  0x57   :  { %5519 = vst [vmem:[#allocation89_spill] sm:$0xff] %v3278_v51  ;;  %v3345_v51 = vld [vmem:[%s5156_s0 + $0xd0] sm:$0x3] }
  0x58   :  { %5520 = vst [vmem:[#allocation90_spill] sm:$0xff] %v3283_v62  ;;  %v3334_v62 = vsel %vm220_vm0, %v307_v5, %v309_v9  ;;  %v346_v9 = vrot.slane %v3313_v36, 1 }
  0x59   :  { %5521 = vst [vmem:[#allocation91_spill] sm:$0xff] %v3290_v22  ;;  %v3340_v22 = vld [vmem:[%s5156_s0 + $0xc8] sm:$0xff]  ;;  %1895 = vmatpush.xpose.msk.msra.mxu2 %vm383_vm1, %v3334_v62 }
  0x5a   :  { %5522 = vst [vmem:[#allocation92_spill] sm:$0xff] %v3295_v18  ;;  %v3350_v18 = vsel %vm220_vm0, %v347_v61, %v349_v57  ;;  %v222_v57 = vrot.slane %v3324_v28, 1 }
  0x5b   :  { %5523 = vst [vmem:[#allocation93_spill] sm:$0xff] %v3302_v30  ;;  %v3356_v30 = vld [vmem:[%s5156_s0 + $0x1b8] sm:$0xff]  ;;  %1912 = vmatpush.xpose.msk.msra.mxu3 %vm383_vm1, %v3350_v18 }
  0x5c   :  { %5524 = vst [vmem:[#allocation94_spill] sm:$0xff] %v3307_v4  ;;  %v3366_v4 = vsel %vm220_vm0, %v226_v27, %v227_v34  ;;  %v3383_v27 = vsel %vm220_vm0, %v266_v33, %v267_v29  ;;  %v262_v34 = vrot.slane %v3340_v22, 1  ;;  %v304_v33 = vrot.slane %v3361_v14, 1  ;;  %v3402_v29 = vld [vmem:[%s5156_s0 + $0xc0] sm:$0xff] }
  0x5d   :  { %5525 = vst [vmem:[#allocation95_spill] sm:$0xff] %v3313_v36  ;;  %v224_v36 = vrot.slane %v3329_v39, 1  ;;  %1862 = vmatpush.xpose.msk.msra.mxu0 %vm383_vm1, %v3366_v4  ;;  %1879 = vmatpush.xpose.msk.msra.mxu1 %vm383_vm1, %v3383_v27 }
  0x5e   :  { %5526 = vst [vmem:[#allocation96_spill] sm:$0xff] %v3318_v44  ;;  %v264_v44 = vrot.slane %v3345_v51, 1 }
  0x5f   :  { %5527 = vst [vmem:[#allocation97_spill] sm:$0xff] %v3324_v28  ;;  %v3395_v28 = vsel %vm220_vm0, %v306_v16, %v307_v5  ;;  %v344_v5 = vrot.slane %v3378_v1, 1  ;;  %v3414_v16 = vld [vmem:[%s5156_s0 + $0x1b0] sm:$0xff] }
  0x60   :  { %5528 = vst [vmem:[#allocation98_spill] sm:$0xff] %v3329_v39  ;;  %v3390_v39 = vld [vmem:[%s5156_s0] sm:$0xff]  ;;  %1896 = vmatpush.xpose.msk.msra.mxu2 %vm383_vm1, %v3395_v28 }
  0x61   :  { %5529 = vst [vmem:[#allocation99_spill] sm:$0xff] %v3334_v62  ;;  %v302_v62 = vrot.slane %v3356_v30, 1 }
  0x62   :  { %5530 = vst [vmem:[#allocation100_spill] sm:$0xff] %v3345_v51  ;;  %v3407_v51 = vsel %vm220_vm0, %v346_v9, %v347_v61  ;;  %v3423_v61 = vld [vmem:[%s5156_s0 + $0x270] sm:$0xff]  ;;  %v3428_v9 = vsel %vm220_vm0, %v262_v34, %v264_v44 }
  0x63   :  { %5531 = vst [vmem:[#allocation101_spill] sm:$0xff] %v3350_v18  ;;  %v342_v18 = vrot.slane %v3373_v45, 1  ;;  %1913 = vmatpush.xpose.msk.msra.mxu3 %vm383_vm1, %v3407_v51  ;;  %1880 = vmatpush.xpose.msk.msra.mxu1 %vm383_vm1, %v3428_v9 }
  0x64   :  { %5532 = vst [vmem:[#allocation102_spill] sm:$0xff] %v3356_v30  ;;  %v221_v30 = vrot.slane %v3390_v39, 1 }
  0x65   :  { %5533 = vst [vmem:[#allocation103_spill] sm:$0xff] %v3361_v14  ;;  %v225_v14 = vsel %vm220_vm0, %v222_v57, %v224_v36  ;;  %v305_v36 = vsel %vm220_vm0, %v302_v62, %v304_v33 }
  0x66   :  { %5534 = vst [vmem:[#allocation104_spill] sm:$0xff] %v3366_v4  ;;  %v261_v4 = vrot.slane %v3402_v29, 1  ;;  %1863 = vmatpush.xpose.msk.msra.mxu0 %vm383_vm1, %v225_v14  ;;  %v223_v44 = vsel %vm220_vm0, %v221_v30, %v222_v57  ;;  %1897 = vmatpush.xpose.msk.msra.mxu2 %vm383_vm1, %v305_v36  ;;  %v5548_v30 = vld [vmem:[#allocation71_spill] sm:$0xff]  ;;  %v5549_v57 = vld [vmem:[#allocation73_spill] sm:$0xff] }
  0x67   :  { %5535 = vst [vmem:[#allocation105_spill] sm:$0xff] %v3378_v1  ;;  %v3437_v1 = vsel %vm220_vm0, %v342_v18, %v344_v5  ;;  %v5552_v5 = vld [vmem:[#allocation80_spill] sm:$0xff]  ;;  %v5553_v36 = vld [vmem:[#allocation83_spill] sm:$0xff] }
  0x68   :  { %5536 = vst [vmem:[#allocation106_spill] sm:$0xff] %v3383_v27  ;;  %v301_v27 = vrot.slane %v3414_v16, 1  ;;  %1914 = vmatpush.xpose.msk.msra.mxu3 %vm383_vm1, %v3437_v1 }
  0x69   :  { %5537 = vst [vmem:[#allocation107_spill] sm:$0xff] %v3390_v39  ;;  %v341_v39 = vrot.slane %v3423_v61, 1 }
  0x6a   :  { %5538 = vst [vmem:[#allocation108_spill] sm:$0xff] %v3395_v28  ;;  %v303_v14 = vsel %vm220_vm0, %v301_v27, %v302_v62  ;;  %1864 = vmatpush.xpose.msk.msra.mxu0 %vm383_vm1, %v223_v44  ;;  %v5546_v62 = vld [vmem:[#allocation66_spill] sm:$0xff]  ;;  %v5550_v27 = vld [vmem:[#allocation75_spill] sm:$0xff]  ;;  %v5557_v28 = vld [vmem:[#allocation5_spill] sm:$0xff] }
  0x6b   :  { %5539 = vst [vmem:[#allocation109_spill] sm:$0xff] %v3407_v51  ;;  %v3445_v51 = vsel %vm220_vm0, %v261_v4, %v262_v34  ;;  %v3452_v33 = vsel %vm220_vm0, %v341_v39, %v342_v18  ;;  %1898 = vmatpush.xpose.msk.msra.mxu2 %vm383_vm1, %v303_v14  ;;  %v1848_v4 = vld [vmem:[%s5157_s1 + $0x8] sm:$0xff]  ;;  %v5545_v18 = vld [vmem:[#allocation63_spill] sm:$0xff]  ;;  %v5547_v39 = vld [vmem:[#allocation69_spill] sm:$0xff] }
  0x6c   :  { %5540 = vst [vmem:[#allocation110_spill] sm:$0xff] %v3414_v16  ;;  %1881 = vmatpush.xpose.msk.msra.mxu1 %vm383_vm1, %v3445_v51  ;;  %1915 = vmatpush.xpose.msk.msra.mxu3 %vm383_vm1, %v3452_v33  ;;  %v5551_v34 = vld [vmem:[#allocation77_spill] sm:$0xff]  ;;  %v5554_v44 = vld [vmem:[#allocation86_spill] sm:$0xff] }
  0x6d   :  { %5541 = vst [vmem:[#allocation111_spill] sm:$0xff] %v3428_v9  ;;  %1865 = vmatmul.msk.f32.vlgmr.msra.gmra.mxu0 %vm383_vm1, %v1848_v4  ;;  %v5555_v14 = vld [vmem:[#allocation89_spill] sm:$0xff]  ;;  %v5559_v9 = vld [vmem:[#allocation6_spill] sm:$0xff] }
  0x6e   :  { %5542 = vst [vmem:[#allocation112_spill] sm:$0xff] %v3437_v1  ;;  %1917 = vmatpush.xpose.msk.msrb.mxu0 %vm383_vm1, %v2578_v0  ;;  %1899 = vmatmul.msk.f32.vlgmr.msra.gmra.mxu2 %vm383_vm1, %v1848_v4  ;;  %v843_v1 = vrot.slane %v2578_v0, 2  ;;  %v963_v0 = vrot.slane %v2612_v10, 2 }
  0x6f   :  { %5543 = vst [vmem:[#allocation113_spill] sm:$0xff] %v3445_v51  ;;  %1951 = vmatpush.xpose.msk.msrb.mxu2 %vm383_vm1, %v2602_v8  ;;  %1916 = vmatmul.msk.f32.vlgmr.msra.gmra.mxu3 %vm383_vm1, %v1848_v4  ;;  %v5558_v51 = vld [vmem:[#allocation93_spill] sm:$0xff] }
  0x70   :  { %5544 = vst [vmem:[#allocation114_spill] sm:$0xff] %v3452_v33  ;;  %1934 = vmatpush.xpose.msk.msrb.mxu1 %vm383_vm1, %v2588_v2  ;;  %1968 = vmatpush.xpose.msk.msrb.mxu3 %vm383_vm1, %v2612_v10  ;;  %v845_v33 = vrot.slane %v5557_v28, 2  ;;  %v923_v28 = vrot.slane %v2602_v8, 2 }
  0x71   :  { %1882 = vmatmul.msk.f32.vlgmr.msra.gmra.mxu1 %vm383_vm1, %v1848_v4  ;;  %v5556_v4 = vld [vmem:[#allocation91_spill] sm:$0xff] }
  0x72   :  { %1918 = vmatpush.xpose.msk.msrb.mxu0 %vm383_vm1, %v2627_v15 }
  0x73   :  { %1952 = vmatpush.xpose.msk.msrb.mxu2 %vm383_vm1, %v2644_v20 }
  0x74   :  { %1935 = vmatpush.xpose.msk.msrb.mxu1 %vm383_vm1, %v2639_v19  ;;  %1969 = vmatpush.xpose.msk.msrb.mxu3 %vm383_vm1, %v2649_v21 }
  0x76   :  { %1919 = vmatpush.xpose.msk.msrb.mxu0 %vm383_vm1, %v2662_v26 }
  0x77   :  { %1953 = vmatpush.xpose.msk.msrb.mxu2 %vm383_vm1, %v2702_v38 }
  0x78   :  { %1936 = vmatpush.xpose.msk.msrb.mxu1 %vm383_vm1, %v2680_v32  ;;  %1970 = vmatpush.xpose.msk.msrb.mxu3 %vm383_vm1, %v2712_v40 }
  0x7a   :  { %1920 = vmatpush.xpose.msk.msrb.mxu0 %vm383_vm1, %v2732_v46 }
  0x7b   :  { %1954 = vmatpush.xpose.msk.msrb.mxu2 %vm383_vm1, %v2748_v52 }
  0x7c   :  { %1937 = vmatpush.xpose.msk.msrb.mxu1 %vm383_vm1, %v2737_v47  ;;  %1971 = vmatpush.xpose.msk.msrb.mxu3 %vm383_vm1, %v2753_v53 }
  0x7e   :  { %1921 = vmatpush.xpose.msk.msrb.mxu0 %vm383_vm1, %v2764_v56 }
  0x7f   :  { %1955 = vmatpush.xpose.msk.msrb.mxu2 %vm383_vm1, %v2796_v3 }
  0x80   :  { %1938 = vmatpush.xpose.msk.msrb.mxu1 %vm383_vm1, %v2780_v60  ;;  %1972 = vmatpush.xpose.msk.msrb.mxu3 %vm383_vm1, %v2813_v13 }
  0x82   :  { %1922 = vmatpush.xpose.msk.msrb.mxu0 %vm383_vm1, %v2830_v25 }
  0x83   :  { %1956 = vmatpush.xpose.msk.msrb.mxu2 %vm383_vm1, %v2854_v50 }
  0x84   :  { %1939 = vmatpush.xpose.msk.msrb.mxu1 %vm383_vm1, %v2842_v37  ;;  %1973 = vmatpush.xpose.msk.msrb.mxu3 %vm383_vm1, %v2865_v49 }
  0x86   :  { %1923 = vmatpush.xpose.msk.msrb.mxu0 %vm383_vm1, %v2876_v12 }
  0x87   :  { %1957 = vmatpush.xpose.msk.msrb.mxu2 %vm383_vm1, %v2908_v58 }
  0x88   :  { %1940 = vmatpush.xpose.msk.msrb.mxu1 %vm383_vm1, %v2892_v6  ;;  %1974 = vmatpush.xpose.msk.msrb.mxu3 %vm383_vm1, %v2925_v41 }
  0x8a   :  { %1924 = vmatpush.xpose.msk.msrb.mxu0 %vm383_vm1, %v2942_v35 }
  0x8b   :  { %1958 = vmatpush.xpose.msk.msrb.mxu2 %vm383_vm1, %v2966_v24 }
  0x8c   :  { %1941 = vmatpush.xpose.msk.msrb.mxu1 %vm383_vm1, %v2954_v63  ;;  %1975 = vmatpush.xpose.msk.msrb.mxu3 %vm383_vm1, %v2977_v48 }
  0x8e   :  { %1925 = vmatpush.xpose.msk.msrb.mxu0 %vm383_vm1, %v2988_v42 }
  0x8f   :  { %1959 = vmatpush.xpose.msk.msrb.mxu2 %vm383_vm1, %v3020_v54 }
  0x90   :  { %1942 = vmatpush.xpose.msk.msrb.mxu1 %vm383_vm1, %v3004_v11  ;;  %1976 = vmatpush.xpose.msk.msrb.mxu3 %vm383_vm1, %v3037_v17 }
  0x92   :  { %1926 = vmatpush.xpose.msk.msrb.mxu0 %vm383_vm1, %v3054_v7 }
  0x93   :  { %1960 = vmatpush.xpose.msk.msrb.mxu2 %vm383_vm1, %v3078_v59 }
  0x94   :  { %1943 = vmatpush.xpose.msk.msrb.mxu1 %vm383_vm1, %v3066_v55  ;;  %1977 = vmatpush.xpose.msk.msrb.mxu3 %vm383_vm1, %v3089_v43 }
  0x96   :  { %1927 = vmatpush.xpose.msk.msrb.mxu0 %vm383_vm1, %v3094_v23 }
  0x97   :  { %1961 = vmatpush.xpose.msk.msrb.mxu2 %vm383_vm1, %v5545_v18 }
  0x98   :  { %1944 = vmatpush.xpose.msk.msrb.mxu1 %vm383_vm1, %v3116_v31  ;;  %1978 = vmatpush.xpose.msk.msrb.mxu3 %vm383_vm1, %v5546_v62 }
  0x9a   :  { %1928 = vmatpush.xpose.msk.msrb.mxu0 %vm383_vm1, %v5547_v39 }
  0x9b   :  { %1962 = vmatpush.xpose.msk.msrb.mxu2 %vm383_vm1, %v5549_v57 }
  0x9c   :  { %1945 = vmatpush.xpose.msk.msrb.mxu1 %vm383_vm1, %v5548_v30  ;;  %1979 = vmatpush.xpose.msk.msrb.mxu3 %vm383_vm1, %v5550_v27  ;;  %v5562_v27 = vld [vmem:[#allocation97_spill] sm:$0xff] }
  0x9e   :  { %1929 = vmatpush.xpose.msk.msrb.mxu0 %vm383_vm1, %v5551_v34  ;;  %v5560_v34 = vld [vmem:[#allocation95_spill] sm:$0xff] }
  0x9f   :  { %1963 = vmatpush.xpose.msk.msrb.mxu2 %vm383_vm1, %v5553_v36  ;;  %v5561_v36 = vld [vmem:[#allocation7_spill] sm:$0xff] }
  0xa0   :  { %1946 = vmatpush.xpose.msk.msrb.mxu1 %vm383_vm1, %v5552_v5  ;;  %1980 = vmatpush.xpose.msk.msrb.mxu3 %vm383_vm1, %v5554_v44  ;;  %v885_v5 = vrot.slane %v5559_v9, 2  ;;  %v883_v44 = vrot.slane %v2588_v2, 2  ;;  %v5564_v9 = vld [vmem:[#allocation102_spill] sm:$0xff]  ;;  %v842_v2 = vrot.slane %v2627_v15, 2 }
  0xa2   :  { %1930 = vmatpush.xpose.msk.msrb.mxu0 %vm383_vm1, %v5555_v14  ;;  %v925_v14 = vrot.slane %v5561_v36, 2  ;;  %v3599_v8 = vsel %vm806_vm2, %v883_v44, %v885_v5  ;;  %v882_v36 = vrot.slane %v2639_v19, 2  ;;  %v123_v19 = vld [vmem:[%s5157_s1] sm:$0xff]  ;;  %v838_v5 = vrot.slane %v2662_v26, 2 }
  0xa3   :  { %1964 = vmatpush.xpose.msk.msrb.mxu2 %vm383_vm1, %v5558_v51  ;;  %5566 = vst [vmem:[#allocation66_spill] sm:$0xff] %v3599_v8  ;;  %v918_v26 = vrot.slane %v2702_v38, 2 }
  0xa4   :  { %1947 = vmatpush.xpose.msk.msrb.mxu1 %vm383_vm1, %v5556_v4  ;;  %1981 = vmatpush.xpose.msk.msrb.mxu3 %vm383_vm1, %v5560_v34  ;;  %v5563_v4 = vld [vmem:[#allocation9_spill] sm:$0xff]  ;;  %v3593_v34 = vsel %vm806_vm2, %v843_v1, %v845_v33  ;;  %v3605_v10 = vsel %vm806_vm2, %v923_v28, %v925_v14  ;;  %v962_v33 = vrot.slane %v2649_v21, 2  ;;  %v5568_v14 = vld [vmem:[#allocation12_spill] sm:$0xff]  ;;  %v3633_v21 = vsel %vm806_vm2, %v882_v36, %v883_v44 }
  0xa5   :  { %v965_v57 = vrot.slane %v5563_v4, 2  ;;  %5565 = vst [vmem:[#allocation63_spill] sm:$0xff] %v3593_v34  ;;  %v5567_v4 = vld [vmem:[#allocation107_spill] sm:$0xff]  ;;  %v5571_v44 = vld [vmem:[#allocation21_spill] sm:$0xff] }
  0xa6   :  { %1931 = vmatpush.xpose.msk.msrb.mxu0 %vm383_vm1, %v5562_v27  ;;  %v960_v36 = vrot.slane %v5571_v44, 2  ;;  %v5573_v44 = vld [vmem:[#allocation25_spill] sm:$0xff] }
  0xa7   :  { %1965 = vmatpush.xpose.msk.msrb.mxu2 %vm383_vm1, %v5564_v9  ;;  %v922_v9 = vrot.slane %v2644_v20, 2  ;;  %v3613_v15 = vsel %vm806_vm2, %v963_v0, %v965_v57  ;;  %v3624_v20 = vsel %vm806_vm2, %v842_v2, %v843_v1  ;;  %v840_v57 = vrot.slane %v5568_v14, 2  ;;  %v5570_v2 = vld [vmem:[#allocation18_spill] sm:$0xff] }
  0xa8   :  { %1948 = vmatpush.xpose.msk.msrb.mxu1 %vm383_vm1, %v3340_v22  ;;  %1982 = vmatpush.xpose.msk.msrb.mxu3 %vm383_vm1, %v3373_v45  ;;  %v920_v14 = vrot.slane %v5570_v2, 2 }
  0xa9   :  { %v3640_v1 = vsel %vm806_vm2, %v922_v9, %v923_v28  ;;  %v3657_v38 = vsel %vm806_vm2, %v838_v5, %v840_v57  ;;  %v837_v28 = vrot.slane %v2732_v46, 2  ;;  %v5572_v57 = vld [vmem:[#allocation23_spill] sm:$0xff] }
  0xaa   :  { %1932 = vmatpush.xpose.msk.msrb.mxu0 %vm383_vm1, %v5567_v4  ;;  %v3670_v9 = vsel %vm806_vm2, %v918_v26, %v920_v14  ;;  %v835_v2 = vrot.slane %v5572_v57, 2  ;;  %v873_v14 = vrot.slane %v2780_v60, 2  ;;  %v953_v60 = vrot.slane %v2813_v13, 2 }
  0xab   :  { %1966 = vmatpush.xpose.msk.msrb.mxu2 %vm383_vm1, %v3414_v16 }
  0xac   :  { %1949 = vmatpush.xpose.msk.msrb.mxu1 %vm383_vm1, %v3402_v29  ;;  %1983 = vmatpush.xpose.msk.msrb.mxu3 %vm383_vm1, %v3423_v61 }
  0xad   :  { %1933 = vmatmul.msk.f32.vlgmr.msrb.gmra.mxu0 %vm383_vm1, %v123_v19 }
  0xae   :  { %1986 = vmatpush.xpose.msk.msra.mxu0 %vm383_vm1, %v3593_v34  ;;  %v5569_v34 = vld [vmem:[#allocation14_spill] sm:$0xff]  ;;  %1967 = vmatmul.msk.f32.vlgmr.msrb.gmra.mxu2 %vm383_vm1, %v123_v19 }
  0xaf   :  { %2020 = vmatpush.xpose.msk.msra.mxu2 %vm383_vm1, %v3605_v10  ;;  %v880_v16 = vrot.slane %v5569_v34, 2  ;;  %v958_v34 = vrot.slane %v2712_v40, 2  ;;  %1984 = vmatmul.msk.f32.vlgmr.msrb.gmra.mxu3 %vm383_vm1, %v123_v19  ;;  %v877_v40 = vrot.slane %v2737_v47, 2  ;;  %v3682_v47 = vsel %vm806_vm2, %v837_v28, %v838_v5 }
  0xb0   :  { %2003 = vmatpush.xpose.msk.msra.mxu1 %vm383_vm1, %v3599_v8  ;;  %v878_v8 = vrot.slane %v2680_v32, 2  ;;  %2037 = vmatpush.xpose.msk.msra.mxu3 %vm383_vm1, %v3613_v15  ;;  %v3649_v32 = vsel %vm806_vm2, %v962_v33, %v963_v0  ;;  %v917_v33 = vrot.slane %v2748_v52, 2 }
  0xb1   :  { %1950 = vmatmul.msk.f32.vlgmr.msrb.gmra.mxu1 %vm383_vm1, %v123_v19  ;;  %v3676_v46 = vsel %vm806_vm2, %v958_v34, %v960_v36  ;;  %v957_v19 = vrot.slane %v2753_v53, 2  ;;  %v875_v53 = vrot.slane %v5573_v44, 2  ;;  %v5574_v36 = vld [vmem:[#allocation27_spill] sm:$0xff]  ;;  %v828_v44 = vrot.slane %v2876_v12, 2 }
  0xb2   :  { %1987 = vmatpush.xpose.msk.msra.mxu0 %vm383_vm1, %v3624_v20  ;;  %v3664_v0 = vsel %vm806_vm2, %v878_v8, %v880_v16  ;;  %v833_v16 = vrot.slane %v2764_v56, 2  ;;  %v3689_v52 = vsel %vm806_vm2, %v877_v40, %v878_v8  ;;  %v3696_v5 = vsel %vm806_vm2, %v917_v33, %v918_v26  ;;  %v5575_v40 = vld [vmem:[#allocation29_spill] sm:$0xff] }
  0xb3   :  { %2021 = vmatpush.xpose.msk.msra.mxu2 %vm383_vm1, %v3640_v1  ;;  %v913_v56 = vrot.slane %v2796_v3, 2  ;;  %v915_v28 = vrot.slane %v5574_v36, 2  ;;  %v3703_v8 = vsel %vm806_vm2, %v957_v19, %v958_v34  ;;  %v955_v57 = vrot.slane %v5575_v40, 2  ;;  %v5581_v40 = vld [vmem:[#allocation37_spill] sm:$0xff] }
  0xb4   :  { %2004 = vmatpush.xpose.msk.msra.mxu1 %vm383_vm1, %v3633_v21  ;;  %2038 = vmatpush.xpose.msk.msra.mxu3 %vm383_vm1, %v3649_v32  ;;  %v3710_v26 = vsel %vm806_vm2, %v833_v16, %v835_v2  ;;  %v832_v3 = vrot.slane %v2830_v25, 2  ;;  %v3716_v33 = vsel %vm806_vm2, %v873_v14, %v875_v53  ;;  %v872_v34 = vrot.slane %v2842_v37, 2  ;;  %v5579_v53 = vld [vmem:[#allocation35_spill] sm:$0xff] }
  0xb5   :  { %v3722_v13 = vsel %vm806_vm2, %v913_v56, %v915_v28  ;;  %v912_v19 = vrot.slane %v2854_v50, 2  ;;  %v3728_v25 = vsel %vm806_vm2, %v953_v60, %v955_v57  ;;  %v952_v2 = vrot.slane %v2865_v49, 2  ;;  %v5583_v57 = vld [vmem:[#allocation39_spill] sm:$0xff] }
  0xb6   :  { %1988 = vmatpush.xpose.msk.msra.mxu0 %vm383_vm1, %v3657_v38  ;;  %5576 = vst [vmem:[#allocation69_spill] sm:$0xff] %v3722_v13  ;;  %v3734_v37 = vsel %vm806_vm2, %v832_v3, %v833_v16  ;;  %v830_v36 = vrot.slane %v5579_v53, 2  ;;  %v3741_v50 = vsel %vm806_vm2, %v872_v34, %v873_v14  ;;  %v868_v28 = vrot.slane %v2892_v6, 2  ;;  %v5585_v34 = vld [vmem:[#allocation41_spill] sm:$0xff] }
  0xb7   :  { %2022 = vmatpush.xpose.msk.msra.mxu2 %vm383_vm1, %v3670_v9  ;;  %5577 = vst [vmem:[#allocation71_spill] sm:$0xff] %v3728_v25  ;;  %v870_v49 = vrot.slane %v5581_v40, 2  ;;  %v3748_v16 = vsel %vm806_vm2, %v912_v19, %v913_v56  ;;  %v908_v12 = vrot.slane %v2908_v58, 2  ;;  %v910_v3 = vrot.slane %v5583_v57, 2 }
  0xb8   :  { %2005 = vmatpush.xpose.msk.msra.mxu1 %vm383_vm1, %v3664_v0  ;;  %2039 = vmatpush.xpose.msk.msra.mxu3 %vm383_vm1, %v3676_v46  ;;  %5578 = vst [vmem:[#allocation5_spill] sm:$0xff] %v3734_v37  ;;  %v3755_v14 = vsel %vm806_vm2, %v952_v2, %v953_v60  ;;  %v948_v6 = vrot.slane %v2925_v41, 2  ;;  %v950_v53 = vrot.slane %v5585_v34, 2  ;;  %v3762_v56 = vsel %vm806_vm2, %v828_v44, %v830_v36  ;;  %v5593_v34 = vld [vmem:[#allocation49_spill] sm:$0xff] }
  0xb9   :  { %5580 = vst [vmem:[#allocation93_spill] sm:$0xff] %v3741_v50  ;;  %v827_v58 = vrot.slane %v2942_v35, 2  ;;  %v3768_v19 = vsel %vm806_vm2, %v868_v28, %v870_v49  ;;  %v867_v60 = vrot.slane %v2954_v63, 2  ;;  %v3774_v41 = vsel %vm806_vm2, %v908_v12, %v910_v3  ;;  %v5591_v49 = vld [vmem:[#allocation47_spill] sm:$0xff] }
  0xba   :  { %1989 = vmatpush.xpose.msk.msra.mxu0 %vm383_vm1, %v3682_v47  ;;  %5582 = vst [vmem:[#allocation6_spill] sm:$0xff] %v3748_v16  ;;  %v907_v2 = vrot.slane %v2966_v24, 2  ;;  %v3780_v35 = vsel %vm806_vm2, %v948_v6, %v950_v53  ;;  %v947_v36 = vrot.slane %v2977_v48, 2  ;;  %v823_v40 = vrot.slane %v2988_v42, 2  ;;  %v5595_v53 = vld [vmem:[#allocation51_spill] sm:$0xff] }
  0xbb   :  { %2023 = vmatpush.xpose.msk.msra.mxu2 %vm383_vm1, %v3696_v5  ;;  %5584 = vst [vmem:[#allocation7_spill] sm:$0xff] %v3755_v14  ;;  %v3786_v63 = vsel %vm806_vm2, %v827_v58, %v828_v44  ;;  %v825_v57 = vrot.slane %v5591_v49, 2  ;;  %v3793_v24 = vsel %vm806_vm2, %v867_v60, %v868_v28  ;;  %v863_v3 = vrot.slane %v3004_v11, 2  ;;  %v5597_v60 = vld [vmem:[#allocation53_spill] sm:$0xff] }
  0xbc   :  { %2006 = vmatpush.xpose.msk.msra.mxu1 %vm383_vm1, %v3689_v52  ;;  %2040 = vmatpush.xpose.msk.msra.mxu3 %vm383_vm1, %v3703_v8  ;;  %5586 = vst [vmem:[#allocation97_spill] sm:$0xff] %v3762_v56  ;;  %v865_v48 = vrot.slane %v5593_v34, 2  ;;  %v3800_v44 = vsel %vm806_vm2, %v907_v2, %v908_v12  ;;  %v903_v42 = vrot.slane %v3020_v54, 2  ;;  %v905_v58 = vrot.slane %v5595_v53, 2 }
  0xbd   :  { %5587 = vst [vmem:[#allocation9_spill] sm:$0xff] %v3768_v19  ;;  %v3807_v28 = vsel %vm806_vm2, %v947_v36, %v948_v6  ;;  %v943_v11 = vrot.slane %v3037_v17, 2  ;;  %v945_v49 = vrot.slane %v5597_v60, 2  ;;  %v3814_v12 = vsel %vm806_vm2, %v823_v40, %v825_v57 }
  0xbe   :  { %1990 = vmatpush.xpose.msk.msra.mxu0 %vm383_vm1, %v3710_v26  ;;  %5588 = vst [vmem:[#allocation107_spill] sm:$0xff] %v3774_v41  ;;  %v822_v54 = vrot.slane %v3054_v7, 2  ;;  %v3820_v2 = vsel %vm806_vm2, %v863_v3, %v865_v48  ;;  %v862_v6 = vrot.slane %v3066_v55, 2  ;;  %v3826_v17 = vsel %vm806_vm2, %v903_v42, %v905_v58  ;;  %v5603_v58 = vld [vmem:[#allocation59_spill] sm:$0xff] }
  0xbf   :  { %2024 = vmatpush.xpose.msk.msra.mxu2 %vm383_vm1, %v3722_v13  ;;  %5589 = vst [vmem:[#allocation12_spill] sm:$0xff] %v3780_v35  ;;  %v902_v36 = vrot.slane %v3078_v59, 2  ;;  %v3832_v57 = vsel %vm806_vm2, %v943_v11, %v945_v49  ;;  %v942_v34 = vrot.slane %v3089_v43, 2  ;;  %v818_v53 = vrot.slane %v3094_v23, 2 }
  0xc0   :  { %2007 = vmatpush.xpose.msk.msra.mxu1 %vm383_vm1, %v3716_v33  ;;  %2041 = vmatpush.xpose.msk.msra.mxu3 %vm383_vm1, %v3728_v25  ;;  %5590 = vst [vmem:[#allocation14_spill] sm:$0xff] %v3786_v63  ;;  %v3838_v48 = vsel %vm806_vm2, %v822_v54, %v823_v40  ;;  %v820_v60 = vrot.slane %v5603_v58, 2  ;;  %v858_v49 = vrot.slane %v3116_v31, 2  ;;  %v898_v54 = vrot.slane %v5545_v18, 2 }
  0xc1   :  { %5592 = vst [vmem:[#allocation18_spill] sm:$0xff] %v3793_v24  ;;  %v3852_v40 = vsel %vm806_vm2, %v902_v36, %v903_v42  ;;  %v817_v36 = vrot.slane %v5547_v39, 2 }
  0xc2   :  { %1991 = vmatpush.xpose.msk.msra.mxu0 %vm383_vm1, %v3734_v37  ;;  %5594 = vst [vmem:[#allocation21_spill] sm:$0xff] %v3800_v44  ;;  %v3866_v42 = vsel %vm806_vm2, %v818_v53, %v820_v60 }
  0xc3   :  { %2025 = vmatpush.xpose.msk.msra.mxu2 %vm383_vm1, %v3748_v16  ;;  %5596 = vst [vmem:[#allocation23_spill] sm:$0xff] %v3807_v28  ;;  %v5635_v16 = vld [vmem:[#allocation100_spill] sm:$0xff] }
  0xc4   :  { %2008 = vmatpush.xpose.msk.msra.mxu1 %vm383_vm1, %v3741_v50  ;;  %2042 = vmatpush.xpose.msk.msra.mxu3 %vm383_vm1, %v3755_v14  ;;  %5598 = vst [vmem:[#allocation25_spill] sm:$0xff] %v3814_v12  ;;  %v850_v50 = vrot.slane %v5635_v16, 2 }
  0xc5   :  { %5599 = vst [vmem:[#allocation27_spill] sm:$0xff] %v3820_v2 }
  0xc6   :  { %1992 = vmatpush.xpose.msk.msra.mxu0 %vm383_vm1, %v3762_v56  ;;  %5600 = vst [vmem:[#allocation29_spill] sm:$0xff] %v3826_v17  ;;  %v5627_v56 = vld [vmem:[#allocation87_spill] sm:$0xff] }
  0xc7   :  { %2026 = vmatpush.xpose.msk.msra.mxu2 %vm383_vm1, %v3774_v41  ;;  %5601 = vst [vmem:[#allocation35_spill] sm:$0xff] %v3832_v57 }
  0xc8   :  { %2009 = vmatpush.xpose.msk.msra.mxu1 %vm383_vm1, %v3768_v19  ;;  %2043 = vmatpush.xpose.msk.msra.mxu3 %vm383_vm1, %v3780_v35  ;;  %5602 = vst [vmem:[#allocation37_spill] sm:$0xff] %v3838_v48  ;;  %v5621_v35 = vld [vmem:[#allocation81_spill] sm:$0xff]  ;;  %v5624_v19 = vld [vmem:[#allocation84_spill] sm:$0xff] }
  0xc9   :  { %5606 = vst [vmem:[#allocation41_spill] sm:$0xff] %v3852_v40  ;;  %v855_v41 = vrot.slane %v5621_v35, 2  ;;  %v935_v35 = vrot.slane %v5627_v56, 2 }
  0xca   :  { %1993 = vmatpush.xpose.msk.msra.mxu0 %vm383_vm1, %v3786_v63  ;;  %5610 = vst [vmem:[#allocation49_spill] sm:$0xff] %v3866_v42 }
  0xcb   :  { %2027 = vmatpush.xpose.msk.msra.mxu2 %vm383_vm1, %v3800_v44 }
  0xcc   :  { %2010 = vmatpush.xpose.msk.msra.mxu1 %vm383_vm1, %v3793_v24  ;;  %2044 = vmatpush.xpose.msk.msra.mxu3 %vm383_vm1, %v3807_v28  ;;  %v5605_v28 = vld [vmem:[#allocation61_spill] sm:$0xff] }
  0xcd   :  { %v860_v44 = vrot.slane %v5605_v28, 2 }
  0xce   :  { %1994 = vmatpush.xpose.msk.msra.mxu0 %vm383_vm1, %v3814_v12  ;;  %v3845_v12 = vsel %vm806_vm2, %v862_v6, %v863_v3  ;;  %v3859_v3 = vsel %vm806_vm2, %v942_v34, %v943_v11  ;;  %v938_v6 = vrot.slane %v5546_v62, 2  ;;  %v857_v11 = vrot.slane %v5548_v30, 2  ;;  %v5613_v34 = vld [vmem:[#allocation73_spill] sm:$0xff] }
  0xcf   :  { %2028 = vmatpush.xpose.msk.msra.mxu2 %vm383_vm1, %v3826_v17  ;;  %5604 = vst [vmem:[#allocation39_spill] sm:$0xff] %v3845_v12  ;;  %v5609_v17 = vld [vmem:[#allocation67_spill] sm:$0xff] }
  0xd0   :  { %2011 = vmatpush.xpose.msk.msra.mxu1 %vm383_vm1, %v3820_v2  ;;  %2045 = vmatpush.xpose.msk.msra.mxu3 %vm383_vm1, %v3832_v57  ;;  %v5607_v2 = vld [vmem:[#allocation64_spill] sm:$0xff]  ;;  %5608 = vst [vmem:[#allocation47_spill] sm:$0xff] %v3859_v3  ;;  %v940_v28 = vrot.slane %v5609_v17, 2 }
  0xd1   :  { %v900_v58 = vrot.slane %v5607_v2, 2  ;;  %v3872_v2 = vsel %vm806_vm2, %v858_v49, %v860_v44  ;;  %v3890_v44 = vsel %vm806_vm2, %v817_v36, %v818_v53  ;;  %v5623_v36 = vld [vmem:[#allocation83_spill] sm:$0xff] }
  0xd2   :  { %1995 = vmatpush.xpose.msk.msra.mxu0 %vm383_vm1, %v3838_v48  ;;  %5611 = vst [vmem:[#allocation51_spill] sm:$0xff] %v3872_v2  ;;  %v3884_v60 = vsel %vm806_vm2, %v938_v6, %v940_v28  ;;  %v5620_v28 = vld [vmem:[#allocation80_spill] sm:$0xff] }
  0xd3   :  { %2029 = vmatpush.xpose.msk.msra.mxu2 %vm383_vm1, %v3852_v40  ;;  %v3878_v17 = vsel %vm806_vm2, %v898_v54, %v900_v58  ;;  %5614 = vst [vmem:[#allocation59_spill] sm:$0xff] %v3884_v60  ;;  %v5615_v40 = vld [vmem:[#allocation75_spill] sm:$0xff]  ;;  %v5618_v58 = vld [vmem:[#allocation78_spill] sm:$0xff]  ;;  %v853_v63 = vrot.slane %v5620_v28, 2 }
  0xd4   :  { %2012 = vmatpush.xpose.msk.msra.mxu1 %vm383_vm1, %v3845_v12  ;;  %2046 = vmatpush.xpose.msk.msra.mxu3 %vm383_vm1, %v3859_v3  ;;  %5612 = vst [vmem:[#allocation53_spill] sm:$0xff] %v3878_v17  ;;  %v897_v12 = vrot.slane %v5613_v34, 2  ;;  %v937_v48 = vrot.slane %v5615_v40, 2  ;;  %v5617_v3 = vld [vmem:[#allocation77_spill] sm:$0xff]  ;;  %v815_v24 = vrot.slane %v5618_v58, 2  ;;  %v895_v58 = vrot.slane %v5624_v19, 2 }
  0xd5   :  { %5616 = vst [vmem:[#allocation61_spill] sm:$0xff] %v3890_v44  ;;  %v813_v57 = vrot.slane %v5617_v3, 2  ;;  %v3924_v19 = vsel %vm806_vm2, %v853_v63, %v855_v41 }
  0xd6   :  { %1996 = vmatpush.xpose.msk.msra.mxu0 %vm383_vm1, %v3866_v42  ;;  %v3897_v42 = vsel %vm806_vm2, %v857_v11, %v858_v49  ;;  %v3904_v53 = vsel %vm806_vm2, %v897_v12, %v898_v54  ;;  %v3911_v49 = vsel %vm806_vm2, %v937_v48, %v938_v6  ;;  %v5626_v11 = vld [vmem:[#allocation86_spill] sm:$0xff]  ;;  %v5629_v54 = vld [vmem:[#allocation89_spill] sm:$0xff]  ;;  %5630 = vst [vmem:[#allocation77_spill] sm:$0xff] %v3924_v19  ;;  %v5631_v48 = vld [vmem:[#allocation91_spill] sm:$0xff] }
  0xd7   :  { %2030 = vmatpush.xpose.msk.msra.mxu2 %vm383_vm1, %v3878_v17  ;;  %5619 = vst [vmem:[#allocation64_spill] sm:$0xff] %v3897_v42  ;;  %v933_v17 = vrot.slane %v5626_v11, 2  ;;  %v3918_v12 = vsel %vm806_vm2, %v813_v57, %v815_v24  ;;  %v852_v6 = vrot.slane %v5631_v48, 2 }
  0xd8   :  { %2013 = vmatpush.xpose.msk.msra.mxu1 %vm383_vm1, %v3872_v2  ;;  %2047 = vmatpush.xpose.msk.msra.mxu3 %vm383_vm1, %v3884_v60  ;;  %5622 = vst [vmem:[#allocation67_spill] sm:$0xff] %v3904_v53  ;;  %v893_v2 = vrot.slane %v5623_v36, 2  ;;  %v812_v60 = vrot.slane %v5629_v54, 2 }
  0xd9   :  { %5625 = vst [vmem:[#allocation73_spill] sm:$0xff] %v3911_v49  ;;  %v3936_v24 = vsel %vm806_vm2, %v933_v17, %v935_v35  ;;  %v848_v35 = vrot.slane %v3340_v22, 2 }
  0xda   :  { %1997 = vmatpush.xpose.msk.msra.mxu0 %vm383_vm1, %v3890_v44  ;;  %5628 = vst [vmem:[#allocation75_spill] sm:$0xff] %v3918_v12  ;;  %v3930_v56 = vsel %vm806_vm2, %v893_v2, %v895_v58  ;;  %v3942_v41 = vsel %vm806_vm2, %v812_v60, %v813_v57  ;;  %v5634_v58 = vld [vmem:[#allocation98_spill] sm:$0xff] }
  0xdb   :  { %2031 = vmatpush.xpose.msk.msra.mxu2 %vm383_vm1, %v3904_v53  ;;  %5632 = vst [vmem:[#allocation78_spill] sm:$0xff] %v3930_v56  ;;  %v5633_v53 = vld [vmem:[#allocation95_spill] sm:$0xff]  ;;  %v810_v14 = vrot.slane %v5634_v58, 2  ;;  %v5636_v60 = vld [vmem:[#allocation102_spill] sm:$0xff] }
  0xdc   :  { %2014 = vmatpush.xpose.msk.msra.mxu1 %vm383_vm1, %v3897_v42  ;;  %2048 = vmatpush.xpose.msk.msra.mxu3 %vm383_vm1, %v3911_v49  ;;  %v892_v42 = vrot.slane %v5558_v51, 2  ;;  %v932_v44 = vrot.slane %v5633_v53, 2  ;;  %v808_v49 = vrot.slane %v5562_v27, 2  ;;  %v888_v27 = vrot.slane %v5636_v60, 2 }
  0xde   :  { %1998 = vmatpush.xpose.msk.msra.mxu0 %vm383_vm1, %v3918_v12  ;;  %v3949_v12 = vsel %vm806_vm2, %v852_v6, %v853_v63  ;;  %v3956_v57 = vsel %vm806_vm2, %v892_v42, %v893_v2  ;;  %v3963_v63 = vsel %vm806_vm2, %v932_v44, %v933_v17  ;;  %v928_v6 = vrot.slane %v3373_v45, 2 }
  0xdf   :  { %2032 = vmatpush.xpose.msk.msra.mxu2 %vm383_vm1, %v3930_v56  ;;  %5638 = vst [vmem:[#allocation80_spill] sm:$0xff] %v3963_v63  ;;  %v5639_v56 = vld [vmem:[#allocation105_spill] sm:$0xff]  ;;  %v811_v42 = vsel %vm806_vm2, %v808_v49, %v810_v14  ;;  %v807_v2 = vrot.slane %v5567_v4, 2  ;;  %v847_v17 = vrot.slane %v3402_v29, 2  ;;  %v927_v4 = vrot.slane %v3423_v61, 2 }
  0xe0   :  { %2015 = vmatpush.xpose.msk.msra.mxu1 %vm383_vm1, %v3924_v19  ;;  %2049 = vmatpush.xpose.msk.msra.mxu3 %vm383_vm1, %v3936_v24  ;;  %v5637_v19 = vld [vmem:[#allocation103_spill] sm:$0xff]  ;;  %v930_v16 = vrot.slane %v5639_v56, 2  ;;  %v5640_v56 = vld [vmem:[#allocation110_spill] sm:$0xff] }
  0xe1   :  { %v890_v58 = vrot.slane %v5637_v19, 2  ;;  %v3974_v19 = vsel %vm806_vm2, %v848_v35, %v850_v50  ;;  %v887_v60 = vrot.slane %v5640_v56, 2  ;;  %v809_v50 = vsel %vm806_vm2, %v807_v2, %v808_v49  ;;  %v4012_v49 = vld [vmem:[%s5156_s0 + $0x338] sm:$0xff]  ;;  %v4079_v2 = vld [vmem:[%s5156_s0 + $0xa8] sm:$0xff] }
  0xe2   :  { %1999 = vmatpush.xpose.msk.msra.mxu0 %vm383_vm1, %v3942_v41  ;;  %v3983_v14 = vsel %vm806_vm2, %v928_v6, %v930_v16  ;;  %v3999_v16 = vld [vmem:[%s5156_s0 + $0x188] sm:$0xff]  ;;  %v4100_v56 = vld [vmem:[%s5156_s0 + $0x318] sm:$0xff] }
  0xe3   :  { %2033 = vmatpush.xpose.msk.msra.mxu2 %vm383_vm1, %v3956_v57  ;;  %v891_v44 = vsel %vm806_vm2, %v888_v27, %v890_v58  ;;  %v889_v58 = vsel %vm806_vm2, %v887_v60, %v888_v27  ;;  %v4037_v27 = vld [vmem:[%s5156_s0 + $0x330] sm:$0xff]  ;;  %v4107_v60 = vld [vmem:[%s5156_s0 + $0x98] sm:$0xff] }
  0xe4   :  { %2016 = vmatpush.xpose.msk.msra.mxu1 %vm383_vm1, %v3949_v12  ;;  %2050 = vmatpush.xpose.msk.msra.mxu3 %vm383_vm1, %v3963_v63  ;;  %v3991_v63 = vsel %vm806_vm2, %v847_v17, %v848_v35  ;;  %v1985_v35 = vld [vmem:[%s5157_s1 + $0x10] sm:$0xff]  ;;  %v4086_v17 = vld [vmem:[%s5156_s0 + $0x168] sm:$0xff] }
  0xe6   :  { %2000 = vmatpush.xpose.msk.msra.mxu0 %vm383_vm1, %v811_v42  ;;  %v4003_v42 = vsel %vm806_vm2, %v927_v4, %v928_v6  ;;  %v4072_v6 = vld [vmem:[%s5156_s0 + $0x320] sm:$0xff]  ;;  %v4114_v4 = vld [vmem:[%s5156_s0 + $0x158] sm:$0xff] }
  0xe7   :  { %2034 = vmatpush.xpose.msk.msra.mxu2 %vm383_vm1, %v891_v44  ;;  %v4093_v44 = vld [vmem:[%s5156_s0 + $0x258] sm:$0xff] }
  0xe8   :  { %2017 = vmatpush.xpose.msk.msra.mxu1 %vm383_vm1, %v3974_v19  ;;  %2051 = vmatpush.xpose.msk.msra.mxu3 %vm383_vm1, %v3983_v14 }
  0xea   :  { %2001 = vmatpush.xpose.msk.msra.mxu0 %vm383_vm1, %v809_v50  ;;  %v4121_v50 = vld [vmem:[%s5156_s0 + $0x248] sm:$0xff] }
  0xeb   :  { %2035 = vmatpush.xpose.msk.msra.mxu2 %vm383_vm1, %v889_v58  ;;  %5641 = vst [vmem:[#allocation81_spill] sm:$0xff] %v4121_v50  ;;  %v4128_v58 = vld [vmem:[%s5156_s0 + $0x308] sm:$0xff] }
  0xec   :  { %2018 = vmatpush.xpose.msk.msra.mxu1 %vm383_vm1, %v3991_v63  ;;  %2052 = vmatpush.xpose.msk.msra.mxu3 %vm383_vm1, %v4003_v42  ;;  %5642 = vst [vmem:[#allocation83_spill] sm:$0xff] %v4128_v58 }
  0xed   :  { %2002 = vmatmul.msk.f32.vlgmr.msra.gmra.mxu0 %vm383_vm1, %v1985_v35 }
  0xee   :  { %2055 = vmatpush.xpose.msk.msrb.mxu0 %vm383_vm1, %v3340_v22  ;;  %v4030_v22 = vld [vmem:[%s5156_s0 + $0x180] sm:$0xff]  ;;  %2036 = vmatmul.msk.f32.vlgmr.msra.gmra.mxu2 %vm383_vm1, %v1985_v35 }
  0xef   :  { %2089 = vmatpush.xpose.msk.msrb.mxu2 %vm383_vm1, %v3373_v45  ;;  %2019 = vmatmul.msk.f32.vlgmr.msra.gmra.mxu1 %vm383_vm1, %v1985_v35  ;;  %v4051_v45 = vld [vmem:[%s5156_s0 + $0xb0] sm:$0xff] }
  0xf0   :  { %2072 = vmatpush.xpose.msk.msrb.mxu1 %vm383_vm1, %v3999_v16  ;;  %2106 = vmatpush.xpose.msk.msrb.mxu3 %vm383_vm1, %v4012_v49 }
  0xf1   :  { %2053 = vmatmul.msk.f32.vlgmr.msra.gmra.mxu3 %vm383_vm1, %v1985_v35  ;;  %v4135_v35 = vld [vmem:[%s5156_s0 + $0x90] sm:$0xff] }
  0xf2   :  { %2056 = vmatpush.xpose.msk.msrb.mxu0 %vm383_vm1, %v3402_v29  ;;  %v4058_v29 = vld [vmem:[%s5156_s0 + $0x170] sm:$0xff]  ;;  %5643 = vst [vmem:[#allocation84_spill] sm:$0xff] %v4135_v35 }
  0xf3   :  { %2090 = vmatpush.xpose.msk.msrb.mxu2 %vm383_vm1, %v3423_v61  ;;  %v4065_v61 = vld [vmem:[%s5156_s0 + $0x260] sm:$0xff] }
  0xf4   :  { %2073 = vmatpush.xpose.msk.msrb.mxu1 %vm383_vm1, %v4030_v22  ;;  %2107 = vmatpush.xpose.msk.msrb.mxu3 %vm383_vm1, %v4037_v27 }
  0xf6   :  { %2057 = vmatpush.xpose.msk.msrb.mxu0 %vm383_vm1, %v4051_v45 }
  0xf7   :  { %2091 = vmatpush.xpose.msk.msrb.mxu2 %vm383_vm1, %v4065_v61 }
  0xf8   :  { %2074 = vmatpush.xpose.msk.msrb.mxu1 %vm383_vm1, %v4058_v29  ;;  %2108 = vmatpush.xpose.msk.msrb.mxu3 %vm383_vm1, %v4072_v6 }
  0xfa   :  { %2058 = vmatpush.xpose.msk.msrb.mxu0 %vm383_vm1, %v4079_v2 }
  0xfb   :  { %2092 = vmatpush.xpose.msk.msrb.mxu2 %vm383_vm1, %v4093_v44 }
  0xfc   :  { %2075 = vmatpush.xpose.msk.msrb.mxu1 %vm383_vm1, %v4086_v17  ;;  %2109 = vmatpush.xpose.msk.msrb.mxu3 %vm383_vm1, %v4100_v56 }
  0xfe   :  { %2059 = vmatpush.xpose.msk.msrb.mxu0 %vm383_vm1, %v4107_v60 }
  0xff   :  { %2093 = vmatpush.xpose.msk.msrb.mxu2 %vm383_vm1, %v4121_v50  ;;  %v4142_v50 = vld [vmem:[%s5156_s0 + $0x150] sm:$0xff] }
 0x100   :  { %2076 = vmatpush.xpose.msk.msrb.mxu1 %vm383_vm1, %v4114_v4  ;;  %2110 = vmatpush.xpose.msk.msrb.mxu3 %vm383_vm1, %v4128_v58  ;;  %5644 = vst [vmem:[#allocation86_spill] sm:$0xff] %v4142_v50  ;;  %v4149_v58 = vld [vmem:[%s5156_s0 + $0x240] sm:$0xff] }
 0x101   :  { %5645 = vst [vmem:[#allocation87_spill] sm:$0xff] %v4149_v58 }
 0x102   :  { %2060 = vmatpush.xpose.msk.msrb.mxu0 %vm383_vm1, %v4135_v35  ;;  %v4156_v35 = vld [vmem:[%s5156_s0 + $0x300] sm:$0xff] }
 0x103   :  { %2094 = vmatpush.xpose.msk.msrb.mxu2 %vm383_vm1, %v4149_v58  ;;  %5646 = vst [vmem:[#allocation89_spill] sm:$0xff] %v4156_v35  ;;  %v4170_v58 = vld [vmem:[%s5156_s0 + $0x140] sm:$0xff] }
 0x104   :  { %2077 = vmatpush.xpose.msk.msrb.mxu1 %vm383_vm1, %v4142_v50  ;;  %2111 = vmatpush.xpose.msk.msrb.mxu3 %vm383_vm1, %v4156_v35  ;;  %v4163_v50 = vld [vmem:[%s5156_s0 + $0x80] sm:$0xff]  ;;  %5648 = vst [vmem:[#allocation95_spill] sm:$0xff] %v4170_v58  ;;  %v4177_v35 = vld [vmem:[%s5156_s0 + $0x230] sm:$0xff] }
 0x105   :  { %5647 = vst [vmem:[#allocation91_spill] sm:$0xff] %v4163_v50 }
 0x106   :  { %2061 = vmatpush.xpose.msk.msrb.mxu0 %vm383_vm1, %v4163_v50  ;;  %5649 = vst [vmem:[#allocation98_spill] sm:$0xff] %v4177_v35  ;;  %v4184_v50 = vld [vmem:[%s5156_s0 + $0x2f0] sm:$0xff] }
 0x107   :  { %2095 = vmatpush.xpose.msk.msrb.mxu2 %vm383_vm1, %v4177_v35  ;;  %5650 = vst [vmem:[#allocation100_spill] sm:$0xff] %v4184_v50  ;;  %v4198_v35 = vld [vmem:[%s5156_s0 + $0x138] sm:$0xff] }
 0x108   :  { %2078 = vmatpush.xpose.msk.msrb.mxu1 %vm383_vm1, %v4170_v58  ;;  %2112 = vmatpush.xpose.msk.msrb.mxu3 %vm383_vm1, %v4184_v50  ;;  %v4191_v58 = vld [vmem:[%s5156_s0 + $0x78] sm:$0xff]  ;;  %5652 = vst [vmem:[#allocation103_spill] sm:$0xff] %v4198_v35  ;;  %v4205_v50 = vld [vmem:[%s5156_s0 + $0x228] sm:$0xff] }
 0x109   :  { %5651 = vst [vmem:[#allocation102_spill] sm:$0xff] %v4191_v58 }
 0x10a   :  { %2062 = vmatpush.xpose.msk.msrb.mxu0 %vm383_vm1, %v4191_v58  ;;  %5653 = vst [vmem:[#allocation105_spill] sm:$0xff] %v4205_v50  ;;  %v4212_v58 = vld [vmem:[%s5156_s0 + $0x2e8] sm:$0xff] }
 0x10b   :  { %2096 = vmatpush.xpose.msk.msrb.mxu2 %vm383_vm1, %v4205_v50  ;;  %5654 = vst [vmem:[#allocation110_spill] sm:$0xff] %v4212_v58  ;;  %v4226_v50 = vld [vmem:[%s5156_s0 + $0x128] sm:$0xff] }
 0x10c   :  { %2079 = vmatpush.xpose.msk.msrb.mxu1 %vm383_vm1, %v4198_v35  ;;  %2113 = vmatpush.xpose.msk.msrb.mxu3 %vm383_vm1, %v4212_v58  ;;  %v4219_v35 = vld [vmem:[%s5156_s0 + $0x68] sm:$0xff]  ;;  %5656 = vst [vmem:[#allocation116_spill] sm:$0xff] %v4226_v50  ;;  %v4233_v58 = vld [vmem:[%s5156_s0 + $0x218] sm:$0xff] }
 0x10d   :  { %5655 = vst [vmem:[#allocation115_spill] sm:$0xff] %v4219_v35 }
 0x10e   :  { %2063 = vmatpush.xpose.msk.msrb.mxu0 %vm383_vm1, %v4219_v35  ;;  %5657 = vst [vmem:[#allocation117_spill] sm:$0xff] %v4233_v58  ;;  %v4240_v35 = vld [vmem:[%s5156_s0 + $0x2d8] sm:$0xff] }
 0x10f   :  { %2097 = vmatpush.xpose.msk.msrb.mxu2 %vm383_vm1, %v4233_v58  ;;  %5658 = vst [vmem:[#allocation118_spill] sm:$0xff] %v4240_v35  ;;  %v4254_v58 = vld [vmem:[%s5156_s0 + $0x120] sm:$0xff] }
 0x110   :  { %2080 = vmatpush.xpose.msk.msrb.mxu1 %vm383_vm1, %v4226_v50  ;;  %2114 = vmatpush.xpose.msk.msrb.mxu3 %vm383_vm1, %v4240_v35  ;;  %v4247_v50 = vld [vmem:[%s5156_s0 + $0x60] sm:$0xff]  ;;  %5660 = vst [vmem:[#allocation120_spill] sm:$0xff] %v4254_v58  ;;  %v4261_v35 = vld [vmem:[%s5156_s0 + $0x210] sm:$0xff] }
 0x111   :  { %5659 = vst [vmem:[#allocation119_spill] sm:$0xff] %v4247_v50 }
 0x112   :  { %2064 = vmatpush.xpose.msk.msrb.mxu0 %vm383_vm1, %v4247_v50  ;;  %5661 = vst [vmem:[#allocation121_spill] sm:$0xff] %v4261_v35  ;;  %v4268_v50 = vld [vmem:[%s5156_s0 + $0x2d0] sm:$0xff] }
 0x113   :  { %2098 = vmatpush.xpose.msk.msrb.mxu2 %vm383_vm1, %v4261_v35  ;;  %5662 = vst [vmem:[#allocation122_spill] sm:$0xff] %v4268_v50  ;;  %v4282_v35 = vld [vmem:[%s5156_s0 + $0x110] sm:$0xff] }
 0x114   :  { %2081 = vmatpush.xpose.msk.msrb.mxu1 %vm383_vm1, %v4254_v58  ;;  %2115 = vmatpush.xpose.msk.msrb.mxu3 %vm383_vm1, %v4268_v50  ;;  %v4275_v58 = vld [vmem:[%s5156_s0 + $0x50] sm:$0xff]  ;;  %v4289_v50 = vld [vmem:[%s5156_s0 + $0x200] sm:$0xff] }
 0x115   :  { %5663 = vst [vmem:[#allocation123_spill] sm:$0xff] %v4275_v58 }
 0x116   :  { %2065 = vmatpush.xpose.msk.msrb.mxu0 %vm383_vm1, %v4275_v58  ;;  %v4296_v58 = vld [vmem:[%s5156_s0 + $0x2c0] sm:$0xff] }
 0x117   :  { %2099 = vmatpush.xpose.msk.msrb.mxu2 %vm383_vm1, %v4289_v50 }
 0x118   :  { %2082 = vmatpush.xpose.msk.msrb.mxu1 %vm383_vm1, %v4282_v35  ;;  %2116 = vmatpush.xpose.msk.msrb.mxu3 %vm383_vm1, %v4296_v58 }
 0x11a   :  { %2066 = vmatpush.xpose.msk.msrb.mxu0 %vm383_vm1, %v3054_v7  ;;  %v4325_v7 = vld [vmem:[%s5156_s0 + $0x190] sm:$0x3] }
 0x11b   :  { %2100 = vmatpush.xpose.msk.msrb.mxu2 %vm383_vm1, %v3078_v59  ;;  %v1288_v59 = vrot.slane %v3999_v16, 1 }
 0x11c   :  { %2083 = vmatpush.xpose.msk.msrb.mxu1 %vm383_vm1, %v3066_v55  ;;  %2117 = vmatpush.xpose.msk.msrb.mxu3 %vm383_vm1, %v3089_v43  ;;  %v4332_v55 = vld [vmem:[%s5156_s0 + $0x340] sm:$0x3]  ;;  %v1290_v43 = vrot.slane %v4325_v7, 1 }
 0x11e   :  { %2067 = vmatpush.xpose.msk.msrb.mxu0 %vm383_vm1, %v3094_v23  ;;  %v1293_v23 = vrot.slane %v4012_v49, 1 }
 0x11f   :  { %2101 = vmatpush.xpose.msk.msrb.mxu2 %vm383_vm1, %v5545_v18  ;;  %v1287_v18 = vrot.slane %v4030_v22, 1 }
 0x120   :  { %2084 = vmatpush.xpose.msk.msrb.mxu1 %vm383_vm1, %v3116_v31  ;;  %2118 = vmatpush.xpose.msk.msrb.mxu3 %vm383_vm1, %v5546_v62  ;;  %v1295_v31 = vrot.slane %v4332_v55, 1  ;;  %v4350_v62 = vsel %vm220_vm0, %v1288_v59, %v1290_v43  ;;  %v5674_v43 = vld [vmem:[#allocation15_spill] sm:$0xff] }
 0x122   :  { %2068 = vmatpush.xpose.msk.msrb.mxu0 %vm383_vm1, %v5547_v39  ;;  %v1292_v39 = vrot.slane %v4037_v27, 1 }
 0x123   :  { %2102 = vmatpush.xpose.msk.msrb.mxu2 %vm383_vm1, %v5613_v34  ;;  %v5665_v34 = vld [vmem:[#allocation112_spill] sm:$0xff] }
 0x124   :  { %2085 = vmatpush.xpose.msk.msrb.mxu1 %vm383_vm1, %v5548_v30  ;;  %2119 = vmatpush.xpose.msk.msrb.mxu3 %vm383_vm1, %v5615_v40  ;;  %v4358_v30 = vsel %vm220_vm0, %v1293_v23, %v1295_v31  ;;  %v2054_v40 = vld [vmem:[%s5157_s1 + $0x18] sm:$0xff]  ;;  %v5676_v31 = vld [vmem:[#allocation17_spill] sm:$0xff] }
 0x126   :  { %2069 = vmatpush.xpose.msk.msrb.mxu0 %vm383_vm1, %v5617_v3  ;;  %v5664_v3 = vld [vmem:[#allocation111_spill] sm:$0xff] }
 0x127   :  { %2103 = vmatpush.xpose.msk.msrb.mxu2 %vm383_vm1, %v5623_v36  ;;  %v5669_v36 = vld [vmem:[#allocation114_spill] sm:$0xff] }
 0x128   :  { %2086 = vmatpush.xpose.msk.msrb.mxu1 %vm383_vm1, %v5620_v28  ;;  %2120 = vmatpush.xpose.msk.msrb.mxu3 %vm383_vm1, %v5626_v11  ;;  %v4380_v28 = vsel %vm220_vm0, %v1292_v39, %v1293_v23  ;;  %v5670_v11 = vld [vmem:[#allocation8_spill] sm:$0xff] }
 0x129   :  { %5667 = vst [vmem:[#allocation112_spill] sm:$0xff] %v4380_v28  ;;  %v5675_v23 = vld [vmem:[#allocation16_spill] sm:$0xff] }
 0x12a   :  { %2070 = vmatpush.xpose.msk.msrb.mxu0 %vm383_vm1, %v5629_v54  ;;  %v5671_v54 = vld [vmem:[#allocation10_spill] sm:$0xff]  ;;  %v5678_v39 = vld [vmem:[#allocation20_spill] sm:$0xff] }
 0x12b   :  { %2104 = vmatpush.xpose.msk.msrb.mxu2 %vm383_vm1, %v5558_v51  ;;  %v4375_v51 = vsel %vm220_vm0, %v1287_v18, %v1288_v59  ;;  %v5673_v59 = vld [vmem:[#allocation13_spill] sm:$0xff]  ;;  %v5677_v18 = vld [vmem:[#allocation19_spill] sm:$0xff] }
 0x12c   :  { %2087 = vmatpush.xpose.msk.msrb.mxu1 %vm383_vm1, %v5631_v48  ;;  %2121 = vmatpush.xpose.msk.msrb.mxu3 %vm383_vm1, %v5633_v53  ;;  %5666 = vst [vmem:[#allocation111_spill] sm:$0xff] %v4375_v51  ;;  %v5668_v53 = vld [vmem:[#allocation113_spill] sm:$0xff]  ;;  %v5672_v48 = vld [vmem:[#allocation11_spill] sm:$0xff] }
 0x12d   :  { %2071 = vmatmul.msk.f32.vlgmr.msrb.gmra.mxu0 %vm383_vm1, %v2054_v40 }
 0x12e   :  { %2124 = vmatpush.xpose.msk.msra.mxu0 %vm383_vm1, %v5664_v3  ;;  %2105 = vmatmul.msk.f32.vlgmr.msrb.gmra.mxu2 %vm383_vm1, %v2054_v40 }
 0x12f   :  { %2158 = vmatpush.xpose.msk.msra.mxu2 %vm383_vm1, %v5665_v34  ;;  %2088 = vmatmul.msk.f32.vlgmr.msrb.gmra.mxu1 %vm383_vm1, %v2054_v40 }
 0x130   :  { %2141 = vmatpush.xpose.msk.msra.mxu1 %vm383_vm1, %v4350_v62  ;;  %2175 = vmatpush.xpose.msk.msra.mxu3 %vm383_vm1, %v4358_v30 }
 0x131   :  { %2122 = vmatmul.msk.f32.vlgmr.msrb.gmra.mxu3 %vm383_vm1, %v2054_v40  ;;  %v5679_v40 = vld [vmem:[#allocation22_spill] sm:$0xff] }
 0x132   :  { %2125 = vmatpush.xpose.msk.msra.mxu0 %vm383_vm1, %v5668_v53 }
 0x133   :  { %2159 = vmatpush.xpose.msk.msra.mxu2 %vm383_vm1, %v5669_v36  ;;  %v5724_v36 = vld [vmem:[#allocation108_spill] sm:$0xff] }
 0x134   :  { %2142 = vmatpush.xpose.msk.msra.mxu1 %vm383_vm1, %v4375_v51  ;;  %2176 = vmatpush.xpose.msk.msra.mxu3 %vm383_vm1, %v4380_v28  ;;  %v5723_v28 = vld [vmem:[#allocation106_spill] sm:$0xff]  ;;  %v5725_v51 = vld [vmem:[#allocation109_spill] sm:$0xff] }
 0x136   :  { %2126 = vmatpush.xpose.msk.msra.mxu0 %vm383_vm1, %v5670_v11  ;;  %v5722_v11 = vld [vmem:[#allocation104_spill] sm:$0xff] }
 0x137   :  { %2160 = vmatpush.xpose.msk.msra.mxu2 %vm383_vm1, %v5672_v48  ;;  %v5680_v48 = vld [vmem:[#allocation24_spill] sm:$0xff] }
 0x138   :  { %2143 = vmatpush.xpose.msk.msra.mxu1 %vm383_vm1, %v5671_v54  ;;  %2177 = vmatpush.xpose.msk.msra.mxu3 %vm383_vm1, %v5673_v59  ;;  %v5681_v59 = vld [vmem:[#allocation26_spill] sm:$0xff]  ;;  %v5719_v54 = vld [vmem:[#allocation96_spill] sm:$0xff] }
 0x13a   :  { %2127 = vmatpush.xpose.msk.msra.mxu0 %vm383_vm1, %v5674_v43  ;;  %v5682_v43 = vld [vmem:[#allocation28_spill] sm:$0xff] }
 0x13b   :  { %2161 = vmatpush.xpose.msk.msra.mxu2 %vm383_vm1, %v5676_v31  ;;  %v5684_v31 = vld [vmem:[#allocation31_spill] sm:$0xff] }
 0x13c   :  { %2144 = vmatpush.xpose.msk.msra.mxu1 %vm383_vm1, %v5675_v23  ;;  %2178 = vmatpush.xpose.msk.msra.mxu3 %vm383_vm1, %v5677_v18  ;;  %v5683_v23 = vld [vmem:[#allocation30_spill] sm:$0xff]  ;;  %v5685_v18 = vld [vmem:[#allocation32_spill] sm:$0xff] }
 0x13e   :  { %2128 = vmatpush.xpose.msk.msra.mxu0 %vm383_vm1, %v5678_v39  ;;  %v5686_v39 = vld [vmem:[#allocation33_spill] sm:$0xff] }
 0x13f   :  { %2162 = vmatpush.xpose.msk.msra.mxu2 %vm383_vm1, %v5680_v48  ;;  %v5688_v48 = vld [vmem:[#allocation36_spill] sm:$0xff] }
 0x140   :  { %2145 = vmatpush.xpose.msk.msra.mxu1 %vm383_vm1, %v5679_v40  ;;  %2179 = vmatpush.xpose.msk.msra.mxu3 %vm383_vm1, %v5681_v59  ;;  %v5687_v40 = vld [vmem:[#allocation34_spill] sm:$0xff] }
 0x141   :  { %v5689_v59 = vld [vmem:[#allocation38_spill] sm:$0xff] }
 0x142   :  { %2129 = vmatpush.xpose.msk.msra.mxu0 %vm383_vm1, %v5682_v43  ;;  %v5690_v43 = vld [vmem:[#allocation40_spill] sm:$0xff] }
 0x143   :  { %2163 = vmatpush.xpose.msk.msra.mxu2 %vm383_vm1, %v5684_v31  ;;  %v5692_v31 = vld [vmem:[#allocation43_spill] sm:$0xff] }
 0x144   :  { %2146 = vmatpush.xpose.msk.msra.mxu1 %vm383_vm1, %v5683_v23  ;;  %2180 = vmatpush.xpose.msk.msra.mxu3 %vm383_vm1, %v5685_v18  ;;  %v5691_v23 = vld [vmem:[#allocation42_spill] sm:$0xff]  ;;  %v5693_v18 = vld [vmem:[#allocation44_spill] sm:$0xff] }
 0x146   :  { %2130 = vmatpush.xpose.msk.msra.mxu0 %vm383_vm1, %v5686_v39  ;;  %v5694_v39 = vld [vmem:[#allocation45_spill] sm:$0xff] }
 0x147   :  { %2164 = vmatpush.xpose.msk.msra.mxu2 %vm383_vm1, %v5688_v48  ;;  %v5696_v48 = vld [vmem:[#allocation48_spill] sm:$0xff] }
 0x148   :  { %2147 = vmatpush.xpose.msk.msra.mxu1 %vm383_vm1, %v5687_v40  ;;  %2181 = vmatpush.xpose.msk.msra.mxu3 %vm383_vm1, %v5689_v59  ;;  %v5695_v40 = vld [vmem:[#allocation46_spill] sm:$0xff] }
 0x149   :  { %v5697_v59 = vld [vmem:[#allocation50_spill] sm:$0xff] }
 0x14a   :  { %2131 = vmatpush.xpose.msk.msra.mxu0 %vm383_vm1, %v5690_v43  ;;  %v5698_v43 = vld [vmem:[#allocation52_spill] sm:$0xff] }
 0x14b   :  { %2165 = vmatpush.xpose.msk.msra.mxu2 %vm383_vm1, %v5692_v31  ;;  %v5700_v31 = vld [vmem:[#allocation55_spill] sm:$0xff] }
 0x14c   :  { %2148 = vmatpush.xpose.msk.msra.mxu1 %vm383_vm1, %v5691_v23  ;;  %2182 = vmatpush.xpose.msk.msra.mxu3 %vm383_vm1, %v5693_v18  ;;  %v5699_v23 = vld [vmem:[#allocation54_spill] sm:$0xff]  ;;  %v5701_v18 = vld [vmem:[#allocation56_spill] sm:$0xff] }
 0x14e   :  { %2132 = vmatpush.xpose.msk.msra.mxu0 %vm383_vm1, %v5694_v39  ;;  %v5702_v39 = vld [vmem:[#allocation57_spill] sm:$0xff] }
 0x14f   :  { %2166 = vmatpush.xpose.msk.msra.mxu2 %vm383_vm1, %v5696_v48  ;;  %v5704_v48 = vld [vmem:[#allocation60_spill] sm:$0xff] }
 0x150   :  { %2149 = vmatpush.xpose.msk.msra.mxu1 %vm383_vm1, %v5695_v40  ;;  %2183 = vmatpush.xpose.msk.msra.mxu3 %vm383_vm1, %v5697_v59  ;;  %v5703_v40 = vld [vmem:[#allocation58_spill] sm:$0xff] }
 0x151   :  { %v5705_v59 = vld [vmem:[#allocation62_spill] sm:$0xff] }
 0x152   :  { %2133 = vmatpush.xpose.msk.msra.mxu0 %vm383_vm1, %v5698_v43  ;;  %v5706_v43 = vld [vmem:[#allocation65_spill] sm:$0xff] }
 0x153   :  { %2167 = vmatpush.xpose.msk.msra.mxu2 %vm383_vm1, %v5700_v31  ;;  %v5708_v31 = vld [vmem:[#allocation70_spill] sm:$0xff] }
 0x154   :  { %2150 = vmatpush.xpose.msk.msra.mxu1 %vm383_vm1, %v5699_v23  ;;  %2184 = vmatpush.xpose.msk.msra.mxu3 %vm383_vm1, %v5701_v18  ;;  %v5707_v23 = vld [vmem:[#allocation68_spill] sm:$0xff] }
 0x155   :  { %v5709_v18 = vld [vmem:[#allocation72_spill] sm:$0xff] }
 0x156   :  { %2134 = vmatpush.xpose.msk.msra.mxu0 %vm383_vm1, %v5702_v39  ;;  %v5710_v39 = vld [vmem:[#allocation74_spill] sm:$0xff] }
 0x157   :  { %2168 = vmatpush.xpose.msk.msra.mxu2 %vm383_vm1, %v5704_v48  ;;  %v5712_v48 = vld [vmem:[#allocation79_spill] sm:$0xff] }
 0x158   :  { %2151 = vmatpush.xpose.msk.msra.mxu1 %vm383_vm1, %v5703_v40  ;;  %2185 = vmatpush.xpose.msk.msra.mxu3 %vm383_vm1, %v5705_v59  ;;  %v5711_v40 = vld [vmem:[#allocation76_spill] sm:$0xff]  ;;  %v5713_v59 = vld [vmem:[#allocation82_spill] sm:$0xff] }
 0x15a   :  { %2135 = vmatpush.xpose.msk.msra.mxu0 %vm383_vm1, %v5706_v43  ;;  %v5714_v43 = vld [vmem:[#allocation85_spill] sm:$0xff] }
 0x15b   :  { %2169 = vmatpush.xpose.msk.msra.mxu2 %vm383_vm1, %v5708_v31  ;;  %v5716_v31 = vld [vmem:[#allocation90_spill] sm:$0xff] }
 0x15c   :  { %2152 = vmatpush.xpose.msk.msra.mxu1 %vm383_vm1, %v5707_v23  ;;  %2186 = vmatpush.xpose.msk.msra.mxu3 %vm383_vm1, %v5709_v18  ;;  %v5715_v23 = vld [vmem:[#allocation88_spill] sm:$0xff] }
 0x15d   :  { %v5717_v18 = vld [vmem:[#allocation92_spill] sm:$0xff] }
 0x15e   :  { %2136 = vmatpush.xpose.msk.msra.mxu0 %vm383_vm1, %v5710_v39  ;;  %v5718_v39 = vld [vmem:[#allocation94_spill] sm:$0xff] }
 0x15f   :  { %2170 = vmatpush.xpose.msk.msra.mxu2 %vm383_vm1, %v5712_v48  ;;  %v1397_v48 = vrot.slane %v4325_v7, 2 }
 0x160   :  { %2153 = vmatpush.xpose.msk.msra.mxu1 %vm383_vm1, %v5711_v40  ;;  %2187 = vmatpush.xpose.msk.msra.mxu3 %vm383_vm1, %v5713_v59  ;;  %v1395_v40 = vrot.slane %v3999_v16, 2  ;;  %v1400_v59 = vrot.slane %v4012_v49, 2 }
 0x162   :  { %2137 = vmatpush.xpose.msk.msra.mxu0 %vm383_vm1, %v5714_v43  ;;  %v5720_v43 = vld [vmem:[#allocation99_spill] sm:$0xff]  ;;  %v4503_v7 = vsel %vm806_vm2, %v1395_v40, %v1397_v48 }
 0x163   :  { %2171 = vmatpush.xpose.msk.msra.mxu2 %vm383_vm1, %v5716_v31  ;;  %v1402_v31 = vrot.slane %v4332_v55, 2  ;;  %v5726_v48 = vld [vmem:[#allocation63_spill] sm:$0xff] }
 0x164   :  { %2154 = vmatpush.xpose.msk.msra.mxu1 %vm383_vm1, %v5715_v23  ;;  %2188 = vmatpush.xpose.msk.msra.mxu3 %vm383_vm1, %v5717_v18  ;;  %v5721_v23 = vld [vmem:[#allocation101_spill] sm:$0xff]  ;;  %v1394_v18 = vrot.slane %v4030_v22, 2 }
 0x165   :  { %v4511_v55 = vsel %vm806_vm2, %v1400_v59, %v1402_v31  ;;  %v5727_v31 = vld [vmem:[#allocation66_spill] sm:$0xff] }
 0x166   :  { %2138 = vmatpush.xpose.msk.msra.mxu0 %vm383_vm1, %v5718_v39  ;;  %v1399_v39 = vrot.slane %v4037_v27, 2 }
 0x167   :  { %2172 = vmatpush.xpose.msk.msra.mxu2 %vm383_vm1, %v5720_v43  ;;  %v2123_v43 = vld [vmem:[%s5157_s1 + $0x20] sm:$0xff] }
 0x168   :  { %2155 = vmatpush.xpose.msk.msra.mxu1 %vm383_vm1, %v5719_v54  ;;  %2189 = vmatpush.xpose.msk.msra.mxu3 %vm383_vm1, %v5721_v23 }
 0x16a   :  { %2139 = vmatpush.xpose.msk.msra.mxu0 %vm383_vm1, %v5722_v11  ;;  %v4533_v11 = vsel %vm806_vm2, %v1399_v39, %v1400_v59  ;;  %v5728_v59 = vld [vmem:[#allocation93_spill] sm:$0xff] }
 0x16b   :  { %2173 = vmatpush.xpose.msk.msra.mxu2 %vm383_vm1, %v5724_v36  ;;  %v4528_v36 = vsel %vm806_vm2, %v1394_v18, %v1395_v40  ;;  %v5729_v18 = vld [vmem:[#allocation6_spill] sm:$0xff]  ;;  %v5730_v40 = vld [vmem:[#allocation7_spill] sm:$0xff]  ;;  %v5731_v39 = vld [vmem:[#allocation97_spill] sm:$0xff] }
 0x16c   :  { %2156 = vmatpush.xpose.msk.msra.mxu1 %vm383_vm1, %v5723_v28  ;;  %2190 = vmatpush.xpose.msk.msra.mxu3 %vm383_vm1, %v5725_v51 }
 0x16d   :  { %2140 = vmatmul.msk.f32.vlgmr.msra.gmra.mxu0 %vm383_vm1, %v2123_v43 }
 0x16e   :  { %2193 = vmatpush.xpose.msk.msrb.mxu0 %vm383_vm1, %v3974_v19  ;;  %2174 = vmatmul.msk.f32.vlgmr.msra.gmra.mxu2 %vm383_vm1, %v2123_v43 }
 0x16f   :  { %2227 = vmatpush.xpose.msk.msrb.mxu2 %vm383_vm1, %v3983_v14  ;;  %2157 = vmatmul.msk.f32.vlgmr.msra.gmra.mxu1 %vm383_vm1, %v2123_v43 }
 0x170   :  { %2210 = vmatpush.xpose.msk.msrb.mxu1 %vm383_vm1, %v4503_v7  ;;  %2244 = vmatpush.xpose.msk.msrb.mxu3 %vm383_vm1, %v4511_v55 }
 0x171   :  { %2191 = vmatmul.msk.f32.vlgmr.msra.gmra.mxu3 %vm383_vm1, %v2123_v43  ;;  %v5732_v43 = vld [vmem:[#allocation9_spill] sm:$0xff] }
 0x172   :  { %2194 = vmatpush.xpose.msk.msrb.mxu0 %vm383_vm1, %v3991_v63 }
 0x173   :  { %2228 = vmatpush.xpose.msk.msrb.mxu2 %vm383_vm1, %v4003_v42 }
 0x174   :  { %2211 = vmatpush.xpose.msk.msrb.mxu1 %vm383_vm1, %v4528_v36  ;;  %2245 = vmatpush.xpose.msk.msrb.mxu3 %vm383_vm1, %v4533_v11 }
 0x176   :  { %2195 = vmatpush.xpose.msk.msrb.mxu0 %vm383_vm1, %v5726_v48 }
 0x177   :  { %2229 = vmatpush.xpose.msk.msrb.mxu2 %vm383_vm1, %v3605_v10 }
 0x178   :  { %2212 = vmatpush.xpose.msk.msrb.mxu1 %vm383_vm1, %v5727_v31  ;;  %2246 = vmatpush.xpose.msk.msrb.mxu3 %vm383_vm1, %v3613_v15 }
 0x17a   :  { %2196 = vmatpush.xpose.msk.msrb.mxu0 %vm383_vm1, %v3624_v20 }
 0x17b   :  { %2230 = vmatpush.xpose.msk.msrb.mxu2 %vm383_vm1, %v3640_v1 }
 0x17c   :  { %2213 = vmatpush.xpose.msk.msrb.mxu1 %vm383_vm1, %v3633_v21  ;;  %2247 = vmatpush.xpose.msk.msrb.mxu3 %vm383_vm1, %v3649_v32 }
 0x17e   :  { %2197 = vmatpush.xpose.msk.msrb.mxu0 %vm383_vm1, %v3657_v38 }
 0x17f   :  { %2231 = vmatpush.xpose.msk.msrb.mxu2 %vm383_vm1, %v3670_v9 }
 0x180   :  { %2214 = vmatpush.xpose.msk.msrb.mxu1 %vm383_vm1, %v3664_v0  ;;  %2248 = vmatpush.xpose.msk.msrb.mxu3 %vm383_vm1, %v3676_v46 }
 0x182   :  { %2198 = vmatpush.xpose.msk.msrb.mxu0 %vm383_vm1, %v3682_v47 }
 0x183   :  { %2232 = vmatpush.xpose.msk.msrb.mxu2 %vm383_vm1, %v3696_v5 }
 0x184   :  { %2215 = vmatpush.xpose.msk.msrb.mxu1 %vm383_vm1, %v3689_v52  ;;  %2249 = vmatpush.xpose.msk.msrb.mxu3 %vm383_vm1, %v3703_v8 }
 0x186   :  { %2199 = vmatpush.xpose.msk.msrb.mxu0 %vm383_vm1, %v3710_v26 }
 0x187   :  { %2233 = vmatpush.xpose.msk.msrb.mxu2 %vm383_vm1, %v3722_v13  ;;  %v5733_v13 = vld [vmem:[#allocation107_spill] sm:$0xff] }
 0x188   :  { %2216 = vmatpush.xpose.msk.msrb.mxu1 %vm383_vm1, %v3716_v33  ;;  %2250 = vmatpush.xpose.msk.msrb.mxu3 %vm383_vm1, %v3728_v25  ;;  %v5734_v25 = vld [vmem:[#allocation12_spill] sm:$0xff] }
 0x18a   :  { %2200 = vmatpush.xpose.msk.msrb.mxu0 %vm383_vm1, %v3734_v37  ;;  %v5735_v37 = vld [vmem:[#allocation14_spill] sm:$0xff] }
 0x18b   :  { %2234 = vmatpush.xpose.msk.msrb.mxu2 %vm383_vm1, %v5729_v18  ;;  %v5737_v18 = vld [vmem:[#allocation21_spill] sm:$0xff] }
 0x18c   :  { %2217 = vmatpush.xpose.msk.msrb.mxu1 %vm383_vm1, %v5728_v59  ;;  %2251 = vmatpush.xpose.msk.msrb.mxu3 %vm383_vm1, %v5730_v40  ;;  %v5736_v59 = vld [vmem:[#allocation18_spill] sm:$0xff]  ;;  %v5738_v40 = vld [vmem:[#allocation23_spill] sm:$0xff] }
 0x18e   :  { %2201 = vmatpush.xpose.msk.msrb.mxu0 %vm383_vm1, %v5731_v39  ;;  %v5739_v39 = vld [vmem:[#allocation25_spill] sm:$0xff] }
 0x18f   :  { %2235 = vmatpush.xpose.msk.msrb.mxu2 %vm383_vm1, %v5733_v13  ;;  %v5741_v13 = vld [vmem:[#allocation29_spill] sm:$0xff] }
 0x190   :  { %2218 = vmatpush.xpose.msk.msrb.mxu1 %vm383_vm1, %v5732_v43  ;;  %2252 = vmatpush.xpose.msk.msrb.mxu3 %vm383_vm1, %v5734_v25  ;;  %v5740_v43 = vld [vmem:[#allocation27_spill] sm:$0xff] }
 0x191   :  { %v5742_v25 = vld [vmem:[#allocation35_spill] sm:$0xff] }
 0x192   :  { %2202 = vmatpush.xpose.msk.msrb.mxu0 %vm383_vm1, %v5735_v37  ;;  %v5743_v37 = vld [vmem:[#allocation37_spill] sm:$0xff] }
 0x193   :  { %2236 = vmatpush.xpose.msk.msrb.mxu2 %vm383_vm1, %v5737_v18  ;;  %v5745_v18 = vld [vmem:[#allocation41_spill] sm:$0xff] }
 0x194   :  { %2219 = vmatpush.xpose.msk.msrb.mxu1 %vm383_vm1, %v5736_v59  ;;  %2253 = vmatpush.xpose.msk.msrb.mxu3 %vm383_vm1, %v5738_v40  ;;  %v5744_v59 = vld [vmem:[#allocation39_spill] sm:$0xff] }
 0x195   :  { %v5746_v40 = vld [vmem:[#allocation47_spill] sm:$0xff] }
 0x196   :  { %2203 = vmatpush.xpose.msk.msrb.mxu0 %vm383_vm1, %v5739_v39  ;;  %v5747_v39 = vld [vmem:[#allocation49_spill] sm:$0xff] }
 0x197   :  { %2237 = vmatpush.xpose.msk.msrb.mxu2 %vm383_vm1, %v5741_v13  ;;  %v5749_v13 = vld [vmem:[#allocation53_spill] sm:$0xff] }
 0x198   :  { %2220 = vmatpush.xpose.msk.msrb.mxu1 %vm383_vm1, %v5740_v43  ;;  %2254 = vmatpush.xpose.msk.msrb.mxu3 %vm383_vm1, %v5742_v25  ;;  %v5748_v43 = vld [vmem:[#allocation51_spill] sm:$0xff] }
 0x199   :  { %v5750_v25 = vld [vmem:[#allocation59_spill] sm:$0xff] }
 0x19a   :  { %2204 = vmatpush.xpose.msk.msrb.mxu0 %vm383_vm1, %v5743_v37  ;;  %v5751_v37 = vld [vmem:[#allocation61_spill] sm:$0xff] }
 0x19b   :  { %2238 = vmatpush.xpose.msk.msrb.mxu2 %vm383_vm1, %v5745_v18  ;;  %v5753_v18 = vld [vmem:[#allocation67_spill] sm:$0xff] }
 0x19c   :  { %2221 = vmatpush.xpose.msk.msrb.mxu1 %vm383_vm1, %v5744_v59  ;;  %2255 = vmatpush.xpose.msk.msrb.mxu3 %vm383_vm1, %v5746_v40  ;;  %v5752_v59 = vld [vmem:[#allocation64_spill] sm:$0xff]  ;;  %v5754_v40 = vld [vmem:[#allocation73_spill] sm:$0xff] }
 0x19e   :  { %2205 = vmatpush.xpose.msk.msrb.mxu0 %vm383_vm1, %v5747_v39  ;;  %v5755_v39 = vld [vmem:[#allocation75_spill] sm:$0xff] }
 0x19f   :  { %2239 = vmatpush.xpose.msk.msrb.mxu2 %vm383_vm1, %v5749_v13  ;;  %v5757_v13 = vld [vmem:[#allocation78_spill] sm:$0xff] }
 0x1a0   :  { %2222 = vmatpush.xpose.msk.msrb.mxu1 %vm383_vm1, %v5748_v43  ;;  %2256 = vmatpush.xpose.msk.msrb.mxu3 %vm383_vm1, %v5750_v25  ;;  %v5756_v43 = vld [vmem:[#allocation77_spill] sm:$0xff] }
 0x1a2   :  { %2206 = vmatpush.xpose.msk.msrb.mxu0 %vm383_vm1, %v5751_v37  ;;  %v2510_v37 = vld [vmem:[%s5156_s0 + $0x288] sm:$0xff] }
 0x1a3   :  { %2240 = vmatpush.xpose.msk.msrb.mxu2 %vm383_vm1, %v5753_v18  ;;  %v4653_v18 = vld [vmem:[%s5156_s0 + $0x1a0] sm:$0xff] }
 0x1a4   :  { %2223 = vmatpush.xpose.msk.msrb.mxu1 %vm383_vm1, %v5752_v59  ;;  %2257 = vmatpush.xpose.msk.msrb.mxu3 %vm383_vm1, %v5754_v40  ;;  %v2507_v40 = vld [vmem:[%s5156_s0 + $0xe0] sm:$0xff]  ;;  %v4685_v59 = vld [vmem:[%s5156_s0 + $0x198] sm:$0xff] }
 0x1a6   :  { %2207 = vmatpush.xpose.msk.msrb.mxu0 %vm383_vm1, %v5755_v39  ;;  %v5758_v39 = vld [vmem:[#allocation80_spill] sm:$0xff] }
 0x1a7   :  { %2241 = vmatpush.xpose.msk.msrb.mxu2 %vm383_vm1, %v5757_v13  ;;  %v4662_v13 = vld [vmem:[%s5156_s0 + $0x350] sm:$0xff] }
 0x1a8   :  { %2224 = vmatpush.xpose.msk.msrb.mxu1 %vm383_vm1, %v5756_v43  ;;  %2258 = vmatpush.xpose.msk.msrb.mxu3 %vm383_vm1, %v3936_v24 }
 0x1aa   :  { %2208 = vmatpush.xpose.msk.msrb.mxu0 %vm383_vm1, %v3942_v41  ;;  %v2192_v41 = vld [vmem:[%s5157_s1 + $0x28] sm:$0xff] }
 0x1ab   :  { %2242 = vmatpush.xpose.msk.msrb.mxu2 %vm383_vm1, %v3956_v57  ;;  %v2508_v57 = vld [vmem:[%s5156_s0 + $0x290] sm:$0xff] }
 0x1ac   :  { %2225 = vmatpush.xpose.msk.msrb.mxu1 %vm383_vm1, %v3949_v12  ;;  %2259 = vmatpush.xpose.msk.msrb.mxu3 %vm383_vm1, %v5758_v39 }
 0x1ad   :  { %2209 = vmatmul.msk.f32.vlgmr.msrb.gmra.mxu0 %vm383_vm1, %v2192_v41 }
 0x1ae   :  { %2262 = vmatpush.xpose.msk.msra.mxu0 %vm383_vm1, %v2507_v40  ;;  %2243 = vmatmul.msk.f32.vlgmr.msrb.gmra.mxu2 %vm383_vm1, %v2192_v41  ;;  %v4692_v40 = vld [vmem:[%s5156_s0 + $0x348] sm:$0xff] }
 0x1af   :  { %2296 = vmatpush.xpose.msk.msra.mxu2 %vm383_vm1, %v2508_v57  ;;  %2226 = vmatmul.msk.f32.vlgmr.msrb.gmra.mxu1 %vm383_vm1, %v2192_v41  ;;  %v2509_v57 = vld [vmem:[%s5156_s0 + $0xd8] sm:$0xff] }
 0x1b0   :  { %2279 = vmatpush.xpose.msk.msra.mxu1 %vm383_vm1, %v4653_v18  ;;  %2313 = vmatpush.xpose.msk.msra.mxu3 %vm383_vm1, %v4662_v13 }
 0x1b1   :  { %2260 = vmatmul.msk.f32.vlgmr.msrb.gmra.mxu3 %vm383_vm1, %v2192_v41  ;;  %v2511_v41 = vld [vmem:[%s5156_s0 + $0xc8] sm:$0xff] }
 0x1b2   :  { %2263 = vmatpush.xpose.msk.msra.mxu0 %vm383_vm1, %v2509_v57  ;;  %v2512_v57 = vld [vmem:[%s5156_s0 + $0x278] sm:$0xff] }
 0x1b3   :  { %2297 = vmatpush.xpose.msk.msra.mxu2 %vm383_vm1, %v2510_v37  ;;  %v2513_v37 = vld [vmem:[%s5156_s0 + $0xc0] sm:$0xff] }
 0x1b4   :  { %2280 = vmatpush.xpose.msk.msra.mxu1 %vm383_vm1, %v4685_v59  ;;  %2314 = vmatpush.xpose.msk.msra.mxu3 %vm383_vm1, %v4692_v40 }
 0x1b6   :  { %2264 = vmatpush.xpose.msk.msra.mxu0 %vm383_vm1, %v2511_v41  ;;  %v5772_v41 = vld [vmem:[#allocation110_spill] sm:$0xff] }
 0x1b7   :  { %2298 = vmatpush.xpose.msk.msra.mxu2 %vm383_vm1, %v2512_v57  ;;  %v5773_v57 = vld [vmem:[#allocation115_spill] sm:$0xff] }
 0x1b8   :  { %2281 = vmatpush.xpose.msk.msra.mxu1 %vm383_vm1, %v3999_v16  ;;  %2315 = vmatpush.xpose.msk.msra.mxu3 %vm383_vm1, %v4012_v49  ;;  %v2514_v16 = vld [vmem:[%s5156_s0 + $0x270] sm:$0xff]  ;;  %v5759_v49 = vld [vmem:[#allocation81_spill] sm:$0xff] }
 0x1ba   :  { %2265 = vmatpush.xpose.msk.msra.mxu0 %vm383_vm1, %v2513_v37  ;;  %v5774_v37 = vld [vmem:[#allocation116_spill] sm:$0xff] }
 0x1bb   :  { %2299 = vmatpush.xpose.msk.msra.mxu2 %vm383_vm1, %v2514_v16  ;;  %v5775_v16 = vld [vmem:[#allocation117_spill] sm:$0xff] }
 0x1bc   :  { %2282 = vmatpush.xpose.msk.msra.mxu1 %vm383_vm1, %v4030_v22  ;;  %2316 = vmatpush.xpose.msk.msra.mxu3 %vm383_vm1, %v4037_v27  ;;  %v5760_v22 = vld [vmem:[#allocation83_spill] sm:$0xff]  ;;  %v5761_v27 = vld [vmem:[#allocation84_spill] sm:$0xff] }
 0x1be   :  { %2266 = vmatpush.xpose.msk.msra.mxu0 %vm383_vm1, %v4051_v45  ;;  %v5762_v45 = vld [vmem:[#allocation86_spill] sm:$0xff] }
 0x1bf   :  { %2300 = vmatpush.xpose.msk.msra.mxu2 %vm383_vm1, %v4065_v61  ;;  %v5764_v61 = vld [vmem:[#allocation89_spill] sm:$0xff] }
 0x1c0   :  { %2283 = vmatpush.xpose.msk.msra.mxu1 %vm383_vm1, %v4058_v29  ;;  %2317 = vmatpush.xpose.msk.msra.mxu3 %vm383_vm1, %v4072_v6  ;;  %v5763_v29 = vld [vmem:[#allocation87_spill] sm:$0xff] }
 0x1c1   :  { %v5765_v6 = vld [vmem:[#allocation91_spill] sm:$0xff] }
 0x1c2   :  { %2267 = vmatpush.xpose.msk.msra.mxu0 %vm383_vm1, %v4079_v2  ;;  %v5766_v2 = vld [vmem:[#allocation95_spill] sm:$0xff] }
 0x1c3   :  { %2301 = vmatpush.xpose.msk.msra.mxu2 %vm383_vm1, %v4093_v44  ;;  %v5768_v44 = vld [vmem:[#allocation100_spill] sm:$0xff] }
 0x1c4   :  { %2284 = vmatpush.xpose.msk.msra.mxu1 %vm383_vm1, %v4086_v17  ;;  %2318 = vmatpush.xpose.msk.msra.mxu3 %vm383_vm1, %v4100_v56  ;;  %v5767_v17 = vld [vmem:[#allocation98_spill] sm:$0xff] }
 0x1c5   :  { %v5769_v56 = vld [vmem:[#allocation102_spill] sm:$0xff] }
 0x1c6   :  { %2268 = vmatpush.xpose.msk.msra.mxu0 %vm383_vm1, %v4107_v60  ;;  %v5770_v60 = vld [vmem:[#allocation103_spill] sm:$0xff] }
 0x1c7   :  { %2302 = vmatpush.xpose.msk.msra.mxu2 %vm383_vm1, %v5759_v49  ;;  %v5776_v49 = vld [vmem:[#allocation118_spill] sm:$0xff] }
 0x1c8   :  { %2285 = vmatpush.xpose.msk.msra.mxu1 %vm383_vm1, %v4114_v4  ;;  %2319 = vmatpush.xpose.msk.msra.mxu3 %vm383_vm1, %v5760_v22  ;;  %v5771_v4 = vld [vmem:[#allocation105_spill] sm:$0xff]  ;;  %v5777_v22 = vld [vmem:[#allocation119_spill] sm:$0xff] }
 0x1ca   :  { %2269 = vmatpush.xpose.msk.msra.mxu0 %vm383_vm1, %v5761_v27  ;;  %v5778_v27 = vld [vmem:[#allocation120_spill] sm:$0xff] }
 0x1cb   :  { %2303 = vmatpush.xpose.msk.msra.mxu2 %vm383_vm1, %v5763_v29  ;;  %v5780_v29 = vld [vmem:[#allocation122_spill] sm:$0xff] }
 0x1cc   :  { %2286 = vmatpush.xpose.msk.msra.mxu1 %vm383_vm1, %v5762_v45  ;;  %2320 = vmatpush.xpose.msk.msra.mxu3 %vm383_vm1, %v5764_v61  ;;  %v5779_v45 = vld [vmem:[#allocation121_spill] sm:$0xff]  ;;  %v5781_v61 = vld [vmem:[#allocation123_spill] sm:$0xff] }
 0x1ce   :  { %2270 = vmatpush.xpose.msk.msra.mxu0 %vm383_vm1, %v5765_v6  ;;  %v2515_v6 = vld [vmem:[%s5156_s0 + $0x48] sm:$0xff] }
 0x1cf   :  { %2304 = vmatpush.xpose.msk.msra.mxu2 %vm383_vm1, %v5767_v17  ;;  %v4827_v17 = vld [vmem:[%s5156_s0 + $0x358] sm:$0x3] }
 0x1d0   :  { %2287 = vmatpush.xpose.msk.msra.mxu1 %vm383_vm1, %v5766_v2  ;;  %2321 = vmatpush.xpose.msk.msra.mxu3 %vm383_vm1, %v5768_v44  ;;  %v2516_v2 = vld [vmem:[%s5156_s0 + $0x108] sm:$0xff]  ;;  %v1605_v44 = vrot.slane %v4653_v18, 1 }
 0x1d2   :  { %2271 = vmatpush.xpose.msk.msra.mxu0 %vm383_vm1, %v5769_v56  ;;  %v2519_v56 = vld [vmem:[%s5156_s0 + $0x38] sm:$0xff] }
 0x1d3   :  { %2305 = vmatpush.xpose.msk.msra.mxu2 %vm383_vm1, %v5771_v4  ;;  %v1610_v4 = vrot.slane %v4662_v13, 1 }
 0x1d4   :  { %2288 = vmatpush.xpose.msk.msra.mxu1 %vm383_vm1, %v5770_v60  ;;  %2322 = vmatpush.xpose.msk.msra.mxu3 %vm383_vm1, %v5772_v41  ;;  %v2520_v41 = vld [vmem:[%s5156_s0 + $0xf8] sm:$0xff] }
 0x1d6   :  { %2272 = vmatpush.xpose.msk.msra.mxu0 %vm383_vm1, %v5773_v57  ;;  %v2521_v57 = vld [vmem:[%s5156_s0 + $0x1e8] sm:$0xff] }
 0x1d7   :  { %2306 = vmatpush.xpose.msk.msra.mxu2 %vm383_vm1, %v5775_v16  ;;  %v2522_v16 = vld [vmem:[%s5156_s0 + $0x2a8] sm:$0xff] }
 0x1d8   :  { %2289 = vmatpush.xpose.msk.msra.mxu1 %vm383_vm1, %v5774_v37  ;;  %2323 = vmatpush.xpose.msk.msra.mxu3 %vm383_vm1, %v5776_v49  ;;  %v1612_v37 = vrot.slane %v4827_v17, 1  ;;  %v1604_v49 = vrot.slane %v4685_v59, 1 }
 0x1da   :  { %2273 = vmatpush.xpose.msk.msra.mxu0 %vm383_vm1, %v5777_v22  ;;  %v2523_v22 = vld [vmem:[%s5156_s0 + $0x30] sm:$0xff] }
 0x1db   :  { %2307 = vmatpush.xpose.msk.msra.mxu2 %vm383_vm1, %v5779_v45  ;;  %v1609_v45 = vrot.slane %v4692_v40, 1 }
 0x1dc   :  { %2290 = vmatpush.xpose.msk.msra.mxu1 %vm383_vm1, %v5778_v27  ;;  %2324 = vmatpush.xpose.msk.msra.mxu3 %vm383_vm1, %v5780_v29  ;;  %v2524_v29 = vld [vmem:[%s5156_s0 + $0xf0] sm:$0xff] }
 0x1de   :  { %2274 = vmatpush.xpose.msk.msra.mxu0 %vm383_vm1, %v5781_v61  ;;  %v2525_v61 = vld [vmem:[%s5156_s0 + $0x1e0] sm:$0xff] }
 0x1df   :  { %2308 = vmatpush.xpose.msk.msra.mxu2 %vm383_vm1, %v4289_v50  ;;  %v4818_v50 = vld [vmem:[%s5156_s0 + $0x1a8] sm:$0x3] }
 0x1e0   :  { %2291 = vmatpush.xpose.msk.msra.mxu1 %vm383_vm1, %v4282_v35  ;;  %2325 = vmatpush.xpose.msk.msra.mxu3 %vm383_vm1, %v4296_v58  ;;  %v2517_v35 = vld [vmem:[%s5156_s0 + $0x1f8] sm:$0xff]  ;;  %v1607_v60 = vrot.slane %v4818_v50, 1 }
 0x1e1   :  { %v2518_v58 = vld [vmem:[%s5156_s0 + $0x2b8] sm:$0xff] }
 0x1e2   :  { %2275 = vmatpush.xpose.msk.msra.mxu0 %vm383_vm1, %v2515_v6  ;;  %v1608_v27 = vsel %vm220_vm0, %v1605_v44, %v1607_v60  ;;  %v1613_v6 = vsel %vm220_vm0, %v1610_v4, %v1612_v37  ;;  %v5792_v60 = vld [vmem:[#allocation19_spill] sm:$0xff]  ;;  %v5796_v37 = vld [vmem:[#allocation26_spill] sm:$0xff] }
 0x1e3   :  { %2309 = vmatpush.xpose.msk.msra.mxu2 %vm383_vm1, %v2517_v35  ;;  %v2526_v35 = vld [vmem:[%s5156_s0 + $0x2a0] sm:$0xff] }
 0x1e4   :  { %2292 = vmatpush.xpose.msk.msra.mxu1 %vm383_vm1, %v2516_v2  ;;  %2326 = vmatpush.xpose.msk.msra.mxu3 %vm383_vm1, %v2518_v58  ;;  %v2261_v2 = vld [vmem:[%s5157_s1 + $0x30] sm:$0xff]  ;;  %v1606_v58 = vsel %vm220_vm0, %v1604_v49, %v1605_v44  ;;  %v5791_v44 = vld [vmem:[#allocation17_spill] sm:$0xff]  ;;  %v5798_v49 = vld [vmem:[#allocation30_spill] sm:$0xff] }
 0x1e6   :  { %2276 = vmatpush.xpose.msk.msra.mxu0 %vm383_vm1, %v2519_v56  ;;  %v1611_v56 = vsel %vm220_vm0, %v1609_v45, %v1610_v4  ;;  %v5793_v4 = vld [vmem:[#allocation20_spill] sm:$0xff] }
 0x1e7   :  { %2310 = vmatpush.xpose.msk.msra.mxu2 %vm383_vm1, %v2521_v57  ;;  %v5795_v57 = vld [vmem:[#allocation24_spill] sm:$0xff] }
 0x1e8   :  { %2293 = vmatpush.xpose.msk.msra.mxu1 %vm383_vm1, %v2520_v41  ;;  %2327 = vmatpush.xpose.msk.msra.mxu3 %vm383_vm1, %v2522_v16  ;;  %v5794_v41 = vld [vmem:[#allocation22_spill] sm:$0xff]  ;;  %v5797_v16 = vld [vmem:[#allocation28_spill] sm:$0xff] }
 0x1e9   :  { %v5800_v45 = vld [vmem:[#allocation32_spill] sm:$0xff] }
 0x1ea   :  { %2277 = vmatpush.xpose.msk.msra.mxu0 %vm383_vm1, %v2523_v22  ;;  %v5799_v22 = vld [vmem:[#allocation31_spill] sm:$0xff] }
 0x1eb   :  { %2311 = vmatpush.xpose.msk.msra.mxu2 %vm383_vm1, %v2525_v61  ;;  %v1712_v61 = vrot.slane %v4653_v18, 2  ;;  %v5806_v18 = vld [vmem:[#allocation42_spill] sm:$0xff] }
 0x1ec   :  { %2294 = vmatpush.xpose.msk.msra.mxu1 %vm383_vm1, %v2524_v29  ;;  %2328 = vmatpush.xpose.msk.msra.mxu3 %vm383_vm1, %v2526_v35  ;;  %v1716_v29 = vrot.slane %v4692_v40, 2  ;;  %v5802_v35 = vld [vmem:[#allocation34_spill] sm:$0xff] }
 0x1ed   :  { %2278 = vmatmul.msk.f32.vlgmr.msra.gmra.mxu0 %vm383_vm1, %v2261_v2 }
 0x1ee   :  { %2331 = vmatpush.xpose.msk.msrb.mxu0 %vm383_vm1, %v5719_v54  ;;  %2312 = vmatmul.msk.f32.vlgmr.msra.gmra.mxu2 %vm383_vm1, %v2261_v2  ;;  %v5784_v54 = vld [vmem:[#allocation112_spill] sm:$0xff] }
 0x1ef   :  { %2365 = vmatpush.xpose.msk.msrb.mxu2 %vm383_vm1, %v5721_v23  ;;  %2295 = vmatmul.msk.f32.vlgmr.msra.gmra.mxu1 %vm383_vm1, %v2261_v2  ;;  %v5790_v23 = vld [vmem:[#allocation16_spill] sm:$0xff] }
 0x1f0   :  { %2348 = vmatpush.xpose.msk.msrb.mxu1 %vm383_vm1, %v1608_v27  ;;  %2382 = vmatpush.xpose.msk.msrb.mxu3 %vm383_vm1, %v1613_v6  ;;  %v1711_v27 = vrot.slane %v4685_v59, 2  ;;  %v5801_v6 = vld [vmem:[#allocation33_spill] sm:$0xff] }
 0x1f1   :  { %2329 = vmatmul.msk.f32.vlgmr.msra.gmra.mxu3 %vm383_vm1, %v2261_v2  ;;  %v1717_v2 = vrot.slane %v4662_v13, 2  ;;  %v5807_v13 = vld [vmem:[#allocation43_spill] sm:$0xff] }
 0x1f2   :  { %2332 = vmatpush.xpose.msk.msrb.mxu0 %vm383_vm1, %v5723_v28  ;;  %v5782_v28 = vld [vmem:[#allocation111_spill] sm:$0xff]  ;;  %v1713_v59 = vsel %vm806_vm2, %v1711_v27, %v1712_v61  ;;  %v5825_v27 = vld [vmem:[#allocation74_spill] sm:$0xff] }
 0x1f3   :  { %2366 = vmatpush.xpose.msk.msrb.mxu2 %vm383_vm1, %v5725_v51  ;;  %v5783_v51 = vld [vmem:[#allocation114_spill] sm:$0xff]  ;;  %v1718_v40 = vsel %vm806_vm2, %v1716_v29, %v1717_v2  ;;  %v5826_v29 = vld [vmem:[#allocation76_spill] sm:$0xff] }
 0x1f4   :  { %2349 = vmatpush.xpose.msk.msrb.mxu1 %vm383_vm1, %v1606_v58  ;;  %2383 = vmatpush.xpose.msk.msrb.mxu3 %vm383_vm1, %v1611_v56  ;;  %v5803_v58 = vld [vmem:[#allocation36_spill] sm:$0xff]  ;;  %v5804_v56 = vld [vmem:[#allocation38_spill] sm:$0xff] }
 0x1f6   :  { %2333 = vmatpush.xpose.msk.msrb.mxu0 %vm383_vm1, %v5664_v3  ;;  %v5785_v3 = vld [vmem:[#allocation8_spill] sm:$0xff] }
 0x1f7   :  { %2367 = vmatpush.xpose.msk.msrb.mxu2 %vm383_vm1, %v5665_v34  ;;  %v5787_v34 = vld [vmem:[#allocation11_spill] sm:$0xff] }
 0x1f8   :  { %2350 = vmatpush.xpose.msk.msrb.mxu1 %vm383_vm1, %v4350_v62  ;;  %2384 = vmatpush.xpose.msk.msrb.mxu3 %vm383_vm1, %v4358_v30  ;;  %v5786_v62 = vld [vmem:[#allocation10_spill] sm:$0xff]  ;;  %v5788_v30 = vld [vmem:[#allocation13_spill] sm:$0xff] }
 0x1fa   :  { %2334 = vmatpush.xpose.msk.msrb.mxu0 %vm383_vm1, %v5668_v53  ;;  %v5789_v53 = vld [vmem:[#allocation15_spill] sm:$0xff] }
 0x1fb   :  { %2368 = vmatpush.xpose.msk.msrb.mxu2 %vm383_vm1, %v5783_v51  ;;  %v5808_v51 = vld [vmem:[#allocation44_spill] sm:$0xff] }
 0x1fc   :  { %2351 = vmatpush.xpose.msk.msrb.mxu1 %vm383_vm1, %v5782_v28  ;;  %2385 = vmatpush.xpose.msk.msrb.mxu3 %vm383_vm1, %v5784_v54  ;;  %v5805_v28 = vld [vmem:[#allocation40_spill] sm:$0xff]  ;;  %v5809_v54 = vld [vmem:[#allocation45_spill] sm:$0xff] }
 0x1fe   :  { %2335 = vmatpush.xpose.msk.msrb.mxu0 %vm383_vm1, %v5785_v3  ;;  %v5810_v3 = vld [vmem:[#allocation46_spill] sm:$0xff] }
 0x1ff   :  { %2369 = vmatpush.xpose.msk.msrb.mxu2 %vm383_vm1, %v5787_v34  ;;  %v5812_v34 = vld [vmem:[#allocation50_spill] sm:$0xff] }
 0x200   :  { %2352 = vmatpush.xpose.msk.msrb.mxu1 %vm383_vm1, %v5786_v62  ;;  %2386 = vmatpush.xpose.msk.msrb.mxu3 %vm383_vm1, %v5788_v30  ;;  %v5811_v62 = vld [vmem:[#allocation48_spill] sm:$0xff] }
 0x201   :  { %v5813_v30 = vld [vmem:[#allocation52_spill] sm:$0xff] }
 0x202   :  { %2336 = vmatpush.xpose.msk.msrb.mxu0 %vm383_vm1, %v5789_v53  ;;  %v5814_v53 = vld [vmem:[#allocation54_spill] sm:$0xff] }
 0x203   :  { %2370 = vmatpush.xpose.msk.msrb.mxu2 %vm383_vm1, %v5791_v44  ;;  %v5816_v44 = vld [vmem:[#allocation56_spill] sm:$0xff] }
 0x204   :  { %2353 = vmatpush.xpose.msk.msrb.mxu1 %vm383_vm1, %v5790_v23  ;;  %2387 = vmatpush.xpose.msk.msrb.mxu3 %vm383_vm1, %v5792_v60  ;;  %v5815_v23 = vld [vmem:[#allocation55_spill] sm:$0xff]  ;;  %v5817_v60 = vld [vmem:[#allocation57_spill] sm:$0xff] }
 0x206   :  { %2337 = vmatpush.xpose.msk.msrb.mxu0 %vm383_vm1, %v5793_v4  ;;  %v5818_v4 = vld [vmem:[#allocation58_spill] sm:$0xff] }
 0x207   :  { %2371 = vmatpush.xpose.msk.msrb.mxu2 %vm383_vm1, %v5795_v57  ;;  %v5820_v57 = vld [vmem:[#allocation62_spill] sm:$0xff] }
 0x208   :  { %2354 = vmatpush.xpose.msk.msrb.mxu1 %vm383_vm1, %v5794_v41  ;;  %2388 = vmatpush.xpose.msk.msrb.mxu3 %vm383_vm1, %v5796_v37  ;;  %v5819_v41 = vld [vmem:[#allocation60_spill] sm:$0xff]  ;;  %v5821_v37 = vld [vmem:[#allocation65_spill] sm:$0xff] }
 0x20a   :  { %2338 = vmatpush.xpose.msk.msrb.mxu0 %vm383_vm1, %v5797_v16  ;;  %v5822_v16 = vld [vmem:[#allocation68_spill] sm:$0xff] }
 0x20b   :  { %2372 = vmatpush.xpose.msk.msrb.mxu2 %vm383_vm1, %v5799_v22  ;;  %v5824_v22 = vld [vmem:[#allocation72_spill] sm:$0xff] }
 0x20c   :  { %2355 = vmatpush.xpose.msk.msrb.mxu1 %vm383_vm1, %v5798_v49  ;;  %2389 = vmatpush.xpose.msk.msrb.mxu3 %vm383_vm1, %v5800_v45  ;;  %v5823_v49 = vld [vmem:[#allocation70_spill] sm:$0xff]  ;;  %v1714_v45 = vrot.slane %v4818_v50, 2 }
 0x20d   :  { %v5831_v50 = vld [vmem:[#allocation90_spill] sm:$0xff] }
 0x20e   :  { %2339 = vmatpush.xpose.msk.msrb.mxu0 %vm383_vm1, %v5801_v6  ;;  %v5827_v6 = vld [vmem:[#allocation79_spill] sm:$0xff] }
 0x20f   :  { %2373 = vmatpush.xpose.msk.msrb.mxu2 %vm383_vm1, %v5803_v58  ;;  %v5828_v58 = vld [vmem:[#allocation82_spill] sm:$0xff] }
 0x210   :  { %2356 = vmatpush.xpose.msk.msrb.mxu1 %vm383_vm1, %v5802_v35  ;;  %2390 = vmatpush.xpose.msk.msrb.mxu3 %vm383_vm1, %v5804_v56  ;;  %v1719_v35 = vrot.slane %v4827_v17, 2  ;;  %v5829_v56 = vld [vmem:[#allocation85_spill] sm:$0xff]  ;;  %v2330_v17 = vld [vmem:[%s5157_s1 + $0x38] sm:$0xff] }
 0x212   :  { %2340 = vmatpush.xpose.msk.msrb.mxu0 %vm383_vm1, %v5805_v28  ;;  %v1715_v28 = vsel %vm806_vm2, %v1712_v61, %v1714_v45  ;;  %v5860_v61 = vld [vmem:[#allocation67_spill] sm:$0xff] }
 0x213   :  { %2374 = vmatpush.xpose.msk.msrb.mxu2 %vm383_vm1, %v5807_v13  ;;  %v1720_v13 = vsel %vm806_vm2, %v1717_v2, %v1719_v35  ;;  %v5861_v2 = vld [vmem:[#allocation73_spill] sm:$0xff] }
 0x214   :  { %2357 = vmatpush.xpose.msk.msrb.mxu1 %vm383_vm1, %v5806_v18  ;;  %2391 = vmatpush.xpose.msk.msrb.mxu3 %vm383_vm1, %v5808_v51  ;;  %v5830_v18 = vld [vmem:[#allocation88_spill] sm:$0xff] }
 0x215   :  { %v5832_v51 = vld [vmem:[#allocation92_spill] sm:$0xff] }
 0x216   :  { %2341 = vmatpush.xpose.msk.msrb.mxu0 %vm383_vm1, %v5809_v54  ;;  %v592_v54 = vpop.f32.mrf.mxu3 }
 0x217   :  { %2375 = vmatpush.xpose.msk.msrb.mxu2 %vm383_vm1, %v5811_v62 }
 0x218   :  { %2358 = vmatpush.xpose.msk.msrb.mxu1 %vm383_vm1, %v5810_v3  ;;  %2392 = vmatpush.xpose.msk.msrb.mxu3 %vm383_vm1, %v5812_v34 }
 0x21a   :  { %2342 = vmatpush.xpose.msk.msrb.mxu0 %vm383_vm1, %v5813_v30 }
 0x21b   :  { %2376 = vmatpush.xpose.msk.msrb.mxu2 %vm383_vm1, %v5815_v23 }
 0x21c   :  { %2359 = vmatpush.xpose.msk.msrb.mxu1 %vm383_vm1, %v5814_v53  ;;  %2393 = vmatpush.xpose.msk.msrb.mxu3 %vm383_vm1, %v5816_v44 }
 0x21e   :  { %2343 = vmatpush.xpose.msk.msrb.mxu0 %vm383_vm1, %v5817_v60  ;;  %v803_v30 = vpop.f32.mrf.mxu3 }
 0x21f   :  { %2377 = vmatpush.xpose.msk.msrb.mxu2 %vm383_vm1, %v5819_v41 }
 0x220   :  { %2360 = vmatpush.xpose.msk.msrb.mxu1 %vm383_vm1, %v5818_v4  ;;  %2394 = vmatpush.xpose.msk.msrb.mxu3 %vm383_vm1, %v5820_v57 }
 0x222   :  { %2344 = vmatpush.xpose.msk.msrb.mxu0 %vm383_vm1, %v5821_v37 }
 0x223   :  { %2378 = vmatpush.xpose.msk.msrb.mxu2 %vm383_vm1, %v5823_v49 }
 0x224   :  { %2361 = vmatpush.xpose.msk.msrb.mxu1 %vm383_vm1, %v5822_v16  ;;  %2395 = vmatpush.xpose.msk.msrb.mxu3 %vm383_vm1, %v5824_v22 }
 0x226   :  { %2345 = vmatpush.xpose.msk.msrb.mxu0 %vm383_vm1, %v5825_v27  ;;  %v1177_v60 = vpop.f32.mrf.mxu3 }
 0x227   :  { %2379 = vmatpush.xpose.msk.msrb.mxu2 %vm383_vm1, %v5827_v6 }
 0x228   :  { %2362 = vmatpush.xpose.msk.msrb.mxu1 %vm383_vm1, %v5826_v29  ;;  %2396 = vmatpush.xpose.msk.msrb.mxu3 %vm383_vm1, %v5828_v58 }
 0x22a   :  { %2346 = vmatpush.xpose.msk.msrb.mxu0 %vm383_vm1, %v5829_v56 }
 0x22b   :  { %2380 = vmatpush.xpose.msk.msrb.mxu2 %vm383_vm1, %v5831_v50 }
 0x22c   :  { %2363 = vmatpush.xpose.msk.msrb.mxu1 %vm383_vm1, %v5830_v18  ;;  %2397 = vmatpush.xpose.msk.msrb.mxu3 %vm383_vm1, %v5832_v51 }
 0x22d   :  { %2347 = vmatmul.msk.f32.vlgmr.msrb.gmra.mxu0 %vm383_vm1, %v2330_v17 }
 0x22e   :  { %2400 = vmatpush.xpose.msk.msra.mxu0 %vm383_vm1, %v5756_v43  ;;  %2381 = vmatmul.msk.f32.vlgmr.msrb.gmra.mxu2 %vm383_vm1, %v2330_v17  ;;  %v2399_v43 = vld [vmem:[%s5157_s1 + $0x40] sm:$0xff]  ;;  %v1278_v37 = vpop.f32.mrf.mxu3  ;;  %s2554_s1 = smov [#allocation2]  }
 0x22f   :  { %2434 = vmatpush.xpose.msk.msra.mxu2 %vm383_vm1, %v3936_v24  ;;  %2364 = vmatmul.msk.f32.vlgmr.msrb.gmra.mxu1 %vm383_vm1, %v2330_v17  ;;  %v5848_v24 = vld [vmem:[#allocation27_spill] sm:$0xff]  ;;  %s1837_s7 = sshll.u32 %s2554_s1, 4  ;;  %s1838_s7 = int_to_ptr.vmem [resolvable:$true] %s1837_s7 }
 0x230   :  { %2417 = vmatpush.xpose.msk.msra.mxu1 %vm383_vm1, %v1715_v28  ;;  %2451 = vmatpush.xpose.msk.msra.mxu3 %vm383_vm1, %v1720_v13 }
 0x231   :  { %2398 = vmatmul.msk.f32.vlgmr.msrb.gmra.mxu3 %vm383_vm1, %v2330_v17 }
 0x232   :  { %2401 = vmatpush.xpose.msk.msra.mxu0 %vm383_vm1, %v3949_v12  ;;  %v5847_v12 = vld [vmem:[#allocation25_spill] sm:$0xff] }
 0x233   :  { %2435 = vmatpush.xpose.msk.msra.mxu2 %vm383_vm1, %v5758_v39  ;;  %v5859_v39 = vld [vmem:[#allocation64_spill] sm:$0xff] }
 0x234   :  { %2418 = vmatpush.xpose.msk.msra.mxu1 %vm383_vm1, %v1713_v59  ;;  %2452 = vmatpush.xpose.msk.msra.mxu3 %vm383_vm1, %v1718_v40  ;;  %v552_v59 = vpop.f32.mrf.mxu1  ;;  %v572_v40 = vpop.f32.mrf.mxu2 }
 0x236   :  { %2402 = vmatpush.xpose.msk.msra.mxu0 %vm383_vm1, %v3974_v19  ;;  %v5850_v19 = vld [vmem:[#allocation35_spill] sm:$0xff]  ;;  %v1387_v27 = vpop.f32.mrf.mxu3 }
 0x237   :  { %2436 = vmatpush.xpose.msk.msra.mxu2 %vm383_vm1, %v3983_v14  ;;  %v5851_v14 = vld [vmem:[#allocation37_spill] sm:$0xff] }
 0x238   :  { %2419 = vmatpush.xpose.msk.msra.mxu1 %vm383_vm1, %v4503_v7  ;;  %2453 = vmatpush.xpose.msk.msra.mxu3 %vm383_vm1, %v4511_v55  ;;  %v5853_v7 = vld [vmem:[#allocation41_spill] sm:$0xff]  ;;  %v5854_v55 = vld [vmem:[#allocation47_spill] sm:$0xff] }
 0x23a   :  { %2403 = vmatpush.xpose.msk.msra.mxu0 %vm383_vm1, %v3991_v63  ;;  %v5849_v63 = vld [vmem:[#allocation29_spill] sm:$0xff] }
 0x23b   :  { %2437 = vmatpush.xpose.msk.msra.mxu2 %vm383_vm1, %v4003_v42  ;;  %v5852_v42 = vld [vmem:[#allocation39_spill] sm:$0xff] }
 0x23c   :  { %2420 = vmatpush.xpose.msk.msra.mxu1 %vm383_vm1, %v4528_v36  ;;  %2454 = vmatpush.xpose.msk.msra.mxu3 %vm383_vm1, %v4533_v11  ;;  %v5855_v36 = vld [vmem:[#allocation49_spill] sm:$0xff]  ;;  %v5856_v11 = vld [vmem:[#allocation51_spill] sm:$0xff]  ;;  %v763_v62 = vpop.f32.mrf.mxu1  ;;  %v783_v34 = vpop.f32.mrf.mxu2 }
 0x23d   :  { %v764_v18 = vadd.f32 %v763_v62, %v552_v59 }
 0x23e   :  { %2404 = vmatpush.xpose.msk.msra.mxu0 %vm383_vm1, %v5726_v48  ;;  %v5857_v48 = vld [vmem:[#allocation53_spill] sm:$0xff]  ;;  %v1494_v35 = vpop.f32.mrf.mxu3 }
 0x23f   :  { %2438 = vmatpush.xpose.msk.msra.mxu2 %vm383_vm1, %v3605_v10  ;;  %v5833_v10 = vld [vmem:[#allocation69_spill] sm:$0xff] }
 0x240   :  { %2421 = vmatpush.xpose.msk.msra.mxu1 %vm383_vm1, %v5727_v31  ;;  %2455 = vmatpush.xpose.msk.msra.mxu3 %vm383_vm1, %v3613_v15  ;;  %v5834_v15 = vld [vmem:[#allocation71_spill] sm:$0xff]  ;;  %v5858_v31 = vld [vmem:[#allocation61_spill] sm:$0xff] }
 0x242   :  { %2405 = vmatpush.xpose.msk.msra.mxu0 %vm383_vm1, %v3624_v20  ;;  %v5835_v20 = vld [vmem:[#allocation5_spill] sm:$0xff] }
 0x243   :  { %2439 = vmatpush.xpose.msk.msra.mxu2 %vm383_vm1, %v3640_v1  ;;  %v5837_v1 = vld [vmem:[#allocation6_spill] sm:$0xff] }
 0x244   :  { %2422 = vmatpush.xpose.msk.msra.mxu1 %vm383_vm1, %v3633_v21  ;;  %2456 = vmatpush.xpose.msk.msra.mxu3 %vm383_vm1, %v3649_v32  ;;  %v5836_v21 = vld [vmem:[#allocation93_spill] sm:$0xff]  ;;  %v5838_v32 = vld [vmem:[#allocation7_spill] sm:$0xff]  ;;  %v1137_v23 = vpop.f32.mrf.mxu1  ;;  %v1157_v44 = vpop.f32.mrf.mxu2 }
 0x245   :  { %v1181_v13 = vadd.f32 %v1137_v23, %v764_v18 }
 0x246   :  { %2406 = vmatpush.xpose.msk.msra.mxu0 %vm383_vm1, %v3657_v38  ;;  %v5839_v38 = vld [vmem:[#allocation97_spill] sm:$0xff] }
 0x247   :  { %2440 = vmatpush.xpose.msk.msra.mxu2 %vm383_vm1, %v3670_v9  ;;  %v5841_v9 = vld [vmem:[#allocation107_spill] sm:$0xff] }
 0x248   :  { %2423 = vmatpush.xpose.msk.msra.mxu1 %vm383_vm1, %v3664_v0  ;;  %2457 = vmatpush.xpose.msk.msra.mxu3 %vm383_vm1, %v3676_v46  ;;  %v5840_v0 = vld [vmem:[#allocation9_spill] sm:$0xff]  ;;  %v5842_v46 = vld [vmem:[#allocation12_spill] sm:$0xff] }
 0x24a   :  { %2407 = vmatpush.xpose.msk.msra.mxu0 %vm383_vm1, %v3682_v47  ;;  %v1818_v47 = vld [vmem:[%s5158_s2] sm:$0xff] }
 0x24b   :  { %2441 = vmatpush.xpose.msk.msra.mxu2 %vm383_vm1, %v3696_v5  ;;  %v5843_v5 = vld [vmem:[#allocation14_spill] sm:$0xff] }
 0x24c   :  { %2424 = vmatpush.xpose.msk.msra.mxu1 %vm383_vm1, %v3689_v52  ;;  %2458 = vmatpush.xpose.msk.msra.mxu3 %vm383_vm1, %v3703_v8  ;;  %v2553_v52 = vmov 0   ;;  %v5844_v8 = vld [vmem:[#allocation18_spill] sm:$0xff]  ;;  %v1238_v41 = vpop.f32.mrf.mxu1  ;;  %v1258_v57 = vpop.f32.mrf.mxu2 }
 0x24d   :  { %2470 = vset.pattern.permute.xlu0 %v2553_v52 }
 0x24e   :  { %2408 = vmatpush.xpose.msk.msra.mxu0 %vm383_vm1, %v3710_v26  ;;  %1821 = vperm.xlu0 %2470, %v1818_v47   ;;  %v5845_v26 = vld [vmem:[#allocation21_spill] sm:$0xff] }
 0x24f   :  { %2442 = vmatpush.xpose.msk.msra.mxu2 %vm383_vm1, %v5833_v10 }
 0x250   :  { %2425 = vmatpush.xpose.msk.msra.mxu1 %vm383_vm1, %v3716_v33  ;;  %2459 = vmatpush.xpose.msk.msra.mxu3 %vm383_vm1, %v5834_v15  ;;  %v5846_v33 = vld [vmem:[#allocation23_spill] sm:$0xff]  ;;  %v1282_v15 = vadd.f32 %v1238_v41, %v1181_v13 }
 0x252   :  { %2409 = vmatpush.xpose.msk.msra.mxu0 %vm383_vm1, %v5835_v20 }
 0x253   :  { %2443 = vmatpush.xpose.msk.msra.mxu2 %vm383_vm1, %v5837_v1 }
 0x254   :  { %2426 = vmatpush.xpose.msk.msra.mxu1 %vm383_vm1, %v5836_v21  ;;  %2460 = vmatpush.xpose.msk.msra.mxu3 %vm383_vm1, %v5838_v32  ;;  %v1347_v49 = vpop.f32.mrf.mxu1  ;;  %v1367_v22 = vpop.f32.mrf.mxu2  ;;  %v784_v32 = vadd.f32 %v783_v34, %v572_v40 }
 0x256   :  { %2410 = vmatpush.xpose.msk.msra.mxu0 %vm383_vm1, %v5839_v38  ;;  %v1391_v38 = vadd.f32 %v1347_v49, %v1282_v15 }
 0x257   :  { %2444 = vmatpush.xpose.msk.msra.mxu2 %vm383_vm1, %v5841_v9 }
 0x258   :  { %2427 = vmatpush.xpose.msk.msra.mxu1 %vm383_vm1, %v5840_v0  ;;  %2461 = vmatpush.xpose.msk.msra.mxu3 %vm383_vm1, %v5842_v46  ;;  %v804_v0 = vadd.f32 %v803_v30, %v592_v54  ;;  %v1182_v46 = vadd.f32 %v1157_v44, %v784_v32 }
 0x25a   :  { %2411 = vmatpush.xpose.msk.msra.mxu0 %vm383_vm1, %v5843_v5  ;;  %v1183_v52 = vadd.f32 %v1177_v60, %v804_v0 }
 0x25b   :  { %2445 = vmatpush.xpose.msk.msra.mxu2 %vm383_vm1, %v5845_v26 }
 0x25c   :  { %2428 = vmatpush.xpose.msk.msra.mxu1 %vm383_vm1, %v5844_v8  ;;  %2462 = vmatpush.xpose.msk.msra.mxu3 %vm383_vm1, %v5846_v33  ;;  %v1454_v29 = vpop.f32.mrf.mxu1  ;;  %v1474_v6 = vpop.f32.mrf.mxu2  ;;  %v1283_v8 = vadd.f32 %v1258_v57, %v1182_v46  ;;  %v1284_v33 = vadd.f32 %v1278_v37, %v1183_v52 }
 0x25d   :  { %v1498_v47 = vadd.f32 %v1454_v29, %v1391_v38 }
 0x25e   :  { %2412 = vmatpush.xpose.msk.msra.mxu0 %vm383_vm1, %v5847_v12 }
 0x25f   :  { %2446 = vmatpush.xpose.msk.msra.mxu2 %vm383_vm1, %v5849_v63 }
 0x260   :  { %2429 = vmatpush.xpose.msk.msra.mxu1 %vm383_vm1, %v5848_v24  ;;  %2463 = vmatpush.xpose.msk.msra.mxu3 %vm383_vm1, %v5850_v19  ;;  %v1392_v19 = vadd.f32 %v1367_v22, %v1283_v8 }
 0x262   :  { %2413 = vmatpush.xpose.msk.msra.mxu0 %vm383_vm1, %v5851_v14 }
 0x263   :  { %2447 = vmatpush.xpose.msk.msra.mxu2 %vm383_vm1, %v5853_v7 }
 0x264   :  { %2430 = vmatpush.xpose.msk.msra.mxu1 %vm383_vm1, %v5852_v42  ;;  %2464 = vmatpush.xpose.msk.msra.mxu3 %vm383_vm1, %v5854_v55  ;;  %v1393_v55 = vadd.f32 %v1387_v27, %v1284_v33 }
 0x266   :  { %2414 = vmatpush.xpose.msk.msra.mxu0 %vm383_vm1, %v5855_v36 }
 0x267   :  { %2448 = vmatpush.xpose.msk.msra.mxu2 %vm383_vm1, %v5857_v48  ;;  %v1499_v48 = vadd.f32 %v1474_v6, %v1392_v19 }
 0x268   :  { %2431 = vmatpush.xpose.msk.msra.mxu1 %vm383_vm1, %v5856_v11  ;;  %2465 = vmatpush.xpose.msk.msra.mxu3 %vm383_vm1, %v5750_v25  ;;  %v532_v25 = vpop.f32.mrf.mxu0 }
 0x26a   :  { %2415 = vmatpush.xpose.msk.msra.mxu0 %vm383_vm1, %v5858_v31 }
 0x26b   :  { %2449 = vmatpush.xpose.msk.msra.mxu2 %vm383_vm1, %v5860_v61 }
 0x26c   :  { %2432 = vmatpush.xpose.msk.msra.mxu1 %vm383_vm1, %v5859_v39  ;;  %2466 = vmatpush.xpose.msk.msra.mxu3 %vm383_vm1, %v5861_v2  ;;  %v1555_v56 = vpop.f32.mrf.mxu1 }
 0x26d   :  { %2416 = vmatmul.msk.f32.vlgmr.msra.gmra.mxu0 %vm383_vm1, %v2399_v43  ;;  %v1599_v26 = vadd.f32 %v1555_v56, %v1498_v47 }
 0x26e   :  { %2450 = vmatmul.msk.f32.vlgmr.msra.gmra.mxu2 %vm383_vm1, %v2399_v43 }
 0x26f   :  { %2433 = vmatmul.msk.f32.vlgmr.msra.gmra.mxu1 %vm383_vm1, %v2399_v43  ;;  %2467 = vmatmul.msk.f32.vlgmr.msra.gmra.mxu3 %vm383_vm1, %v2399_v43  ;;  %v1500_v43 = vadd.f32 %v1494_v35, %v1393_v55 }
 0x270   :  { %v743_v3 = vpop.f32.mrf.mxu0 }
 0x271   :  { %v744_v28 = vadd.f32 %v743_v3, %v532_v25  ;;  %v1575_v51 = vpop.f32.mrf.mxu2 }
 0x272   :  { %v1600_v61 = vadd.f32 %v1575_v51, %v1499_v48 }
 0x274   :  { %v1595_v10 = vpop.f32.mrf.mxu3 }
 0x275   :  { %v1601_v25 = vadd.f32 %v1595_v10, %v1500_v43 }
 0x278   :  { %v1117_v53 = vpop.f32.mrf.mxu0 }
 0x279   :  { %v1180_v50 = vadd.f32 %v1117_v53, %v744_v28 }
 0x280   :  { %v1218_v4 = vpop.f32.mrf.mxu0 }
 0x281   :  { %v1281_v17 = vadd.f32 %v1218_v4, %v1180_v50 }
 0x288   :  { %v1327_v16 = vpop.f32.mrf.mxu0 }
 0x289   :  { %v1390_v21 = vadd.f32 %v1327_v16, %v1281_v17 }
 0x290   :  { %v1434_v45 = vpop.f32.mrf.mxu0 }
 0x291   :  { %v1497_v9 = vadd.f32 %v1434_v45, %v1390_v21 }
 0x298   :  { %v1535_v58 = vpop.f32.mrf.mxu0 }
 0x299   :  { %v1598_v5 = vadd.f32 %v1535_v58, %v1497_v9 }
 0x2aa   :  { %v1644_v20 = vpop.f32.mrf.mxu0 }
 0x2ab   :  { %v1707_v12 = vadd.f32 %v1644_v20, %v1598_v5 }
 0x2ac   :  { %v1664_v1 = vpop.f32.mrf.mxu1 }
 0x2ad   :  { %v1708_v14 = vadd.f32 %v1664_v1, %v1599_v26 }
 0x2b1   :  { %v1684_v24 = vpop.f32.mrf.mxu2 }
 0x2b2   :  { %v1709_v59 = vadd.f32 %v1684_v24, %v1600_v61 }
 0x2b4   :  { %v1704_v63 = vpop.f32.mrf.mxu3 }
 0x2b5   :  { %v1710_v40 = vadd.f32 %v1704_v63, %v1601_v25 }
 0x2c0   :  { %v1822_v7 = vpop.permute.xlu0 %1821 }
 0x2ea   :  { %v1751_v42 = vpop.f32.mrf.mxu0 }
 0x2eb   :  { %v1814_v36 = vadd.f32 %v1751_v42, %v1707_v12 }
 0x2ec   :  { %v1771_v11 = vpop.f32.mrf.mxu1 }
 0x2ed   :  { %v1815_v31 = vadd.f32 %v1771_v11, %v1708_v14  ;;  %v1824_v39 = vadd.f32 %v1822_v7, %v1814_v36 }
 0x2ef   :  { %v1825_v2 = vadd.f32 %v1822_v7, %v1815_v31  ;;  %1828 = vst [vmem:[#allocation2] sm:$0xff] %v1824_v39 }
 0x2f1   :  { %1829 = vst [vmem:[#allocation2 + $0x8] sm:$0xff] %v1825_v2  ;;  %v1791_v54 = vpop.f32.mrf.mxu2 }
 0x2f2   :  { %v1816_v3 = vadd.f32 %v1791_v54, %v1709_v59  ;;  %v1811_v62 = vpop.f32.mrf.mxu3 }
 0x2f3   :  { %v1817_v34 = vadd.f32 %v1811_v62, %v1710_v40 }
 0x2f4   :  { %v1826_v30 = vadd.f32 %v1822_v7, %v1816_v3 }
 0x2f5   :  { %v1827_v53 = vadd.f32 %v1822_v7, %v1817_v34 }
 0x2f6   :  { %1830 = vst [vmem:[#allocation2 + $0x10] sm:$0xff] %v1826_v30 }
 0x2f7   :  { %1831 = vst [vmem:[#allocation2 + $0x18] sm:$0xff] %v1827_v53 }
 0x2f8   :  { %1842 = dma.vmem_to_hbm [thread:$0]  %s1838_s7, 512, %s1840_s10, [#allocation3]  }
 0x2f9   :  { %2551 = dma.done.wait [#allocation3], 512  }
 0x2fa   :  { %2552 = vsyncadd [#allocation3], 4294966784 }
 0x2fb   :  { %1847 = vsyncpa [#allocation3], 1 }

</bundles_post_ra>
